<compile_context>
chip_gen: v7x
topology: tpu7x:2x2x1
jax: 0.10.0
libtpu: 0.0.40
codegen_flags: <defaults>
</compile_context>

<pallas_src>
import math
import functools

import jax
import jax.numpy as jnp
import numpy as np
from jax.experimental import pallas as pl
from jax.experimental.pallas import tpu as pltpu

EPS = 1e-6
NEG_INF = -1000000000.0          # same constant as the reference masked_fill
MXU_DTYPE = jnp.bfloat16         # matmul operand dtype (accumulate in f32)
LANE = 128


# ----------------------------- in-kernel helpers -----------------------------

def _layer_norm(x, g, b, eps=EPS):
    """x: (S, D), g/b: (1, D).  Matches the reference LayerNorm: unbiased std
    (N-1) and division by (std + eps)."""
    d = x.shape[-1]
    mean = jnp.mean(x, axis=-1, keepdims=True)
    diff = x - mean
    var = jnp.sum(diff * diff, axis=-1, keepdims=True) / (d - 1)
    return g * diff / (jnp.sqrt(var) + eps) + b


def _mha(y, bias, wq, bq, wk, bk, wv, bv, wo, bo):
    """Multi-head self-attention with all heads fused into batched contractions.

      y        : (S, D) f32
      bias     : additive mask (0 / -1e9), broadcastable to (H, S, S); added once.
      wq/wk/wv : (H, D, d_k) -- 1/sqrt(d_k) is pre-folded into wq/bq wrapper-side
      bq/bk/bv : (H, 1, d_k)
      wo       : (H, d_k, D),  bo: (1, D)
    """
    h, d, _ = wq.shape
    s_len = y.shape[0]
    yb = jnp.broadcast_to(y.astype(MXU_DTYPE)[None], (h, s_len, d))
    q = jnp.einsum('hsd,hdk->hsk', yb, wq, preferred_element_type=jnp.float32) + bq
    k = jnp.einsum('hsd,hdk->hsk', yb, wk, preferred_element_type=jnp.float32) + bk
    v = jnp.einsum('hsd,hdk->hsk', yb, wv, preferred_element_type=jnp.float32) + bv
    scores = jnp.einsum('hqc,hkc->hqk', q.astype(MXU_DTYPE), k.astype(MXU_DTYPE),
                        preferred_element_type=jnp.float32) + bias        # (H,S,S)
    scores = scores - jnp.max(scores, axis=-1, keepdims=True)
    p = jnp.exp(scores)
    p = p * pl.reciprocal(jnp.sum(p, axis=-1, keepdims=True), approx=True)
    ctx = jnp.einsum('hqk,hkc->hqc', p.astype(MXU_DTYPE), v.astype(MXU_DTYPE),
                     preferred_element_type=jnp.float32)                  # (H,S,d_k)
    out = jnp.einsum('hqc,hcd->hqd', ctx.astype(MXU_DTYPE), wo,
                     preferred_element_type=jnp.float32)                  # (H,S,D)
    return jnp.sum(out, axis=0) + bo


def _ffn(y, w1, b1, w2, b2):
    """Position-wise FFN: Conv1d(kernel_size=1) == matmul."""
    h = jnp.dot(y.astype(MXU_DTYPE), w1, preferred_element_type=jnp.float32) + b1
    h = jnp.maximum(h, 0.0)
    return jnp.dot(h.astype(MXU_DTYPE), w2, preferred_element_type=jnp.float32) + b2


# --------------------------- fused decoder+head kernel ------------------------

def _decoder_kernel(
        # per-batch activations / additive mask biases
        xt_ref, sb_ref, tb_ref,
        # per-layer stacks (streamed one layer at a time over grid axis 1)
        ln1g, ln1b, swq, sbq, swk, sbk, swv, sbv, swo, sbo,
        ln2g, ln2b, cwq, cbq, cwk, cbk, cwv, cbv, cwo, cbo,
        ln3g, ln3b, w1, b1, w2, b2,
        # final norm + classification head (vocab padded to 128 lanes)
        dng, dnb, wc, bc,
        # output + activation carry (VMEM scratch, persists across layer steps)
        o_ref, z_ref):
    layer = pl.program_id(1)

    @pl.when(layer == 0)
    def _():
        z_ref[...] = xt_ref[0].astype(jnp.float32)

    src_bias = sb_ref[0]                      # (1, T) additive key mask
    tgt_bias = tb_ref[0]                      # (T, T) additive causal mask

    z = z_ref[...]
    # sublayer 1: decoder self-attention (tgt_mask)
    y = _layer_norm(z, ln1g[0], ln1b[0])
    z = z + _mha(y, tgt_bias, swq[0], sbq[0], swk[0], sbk[0], swv[0], sbv[0],
                 swo[0], sbo[0])
    # sublayer 2: reference "encoder_attn" == self-attention over the decoder
    # stream with src_mask (the reference ignores encoder_out entirely)
    y = _layer_norm(z, ln2g[0], ln2b[0])
    z = z + _mha(y, src_bias, cwq[0], cbq[0], cwk[0], cbk[0], cwv[0], cbv[0],
                 cwo[0], cbo[0])
    # sublayer 3: position-wise FFN
    y = _layer_norm(z, ln3g[0], ln3b[0])
    z = z + _ffn(y, w1[0], b1[0], w2[0], b2[0])
    z_ref[...] = z

    # final norm + classification head only on the last layer step; the output
    # block index is constant across the layer axis so HBM writeback happens
    # once per batch element (lane-dense, vocab padded to 128).
    @pl.when(layer == pl.num_programs(1) - 1)
    def _():
        yf = _layer_norm(z, dng[...], dnb[...])
        logits = jnp.dot(yf.astype(MXU_DTYPE), wc[...],
                         preferred_element_type=jnp.float32) + bc[...]
        o_ref[0] = logits.astype(o_ref.dtype)


# ------------------------------ pallas wrapper --------------------------------

def _batch_spec(shape):
    nd = len(shape)
    return pl.BlockSpec((1,) + tuple(shape[1:]),
                        lambda b, l, _n=nd: (b,) + (0,) * (_n - 1))


def _layer_spec(shape):
    nd = len(shape)
    return pl.BlockSpec((1,) + tuple(shape[1:]),
                        lambda b, l, _n=nd: (l,) + (0,) * (_n - 1))


def _global_spec(arr):
    nd = arr.ndim
    return pl.BlockSpec(arr.shape, lambda b, l, _n=nd: (0,) * _n)


def _split_heads_proj(w, b, h, scale=1.0):
    """w: (L, D, D) (out = x @ w), b: (L, D) -> heads on the leading axis:
    (L, H, D, d_k) / (L, H, 1, d_k).  Wrapper-side layout plumbing only."""
    L, D, _ = w.shape
    dk = D // h
    w_h = (w.reshape(L, D, h, dk).transpose(0, 2, 1, 3) * scale).astype(MXU_DTYPE)
    b_h = (b.reshape(L, h, 1, dk) * scale).astype(jnp.float32)
    return w_h, b_h


def _split_heads_out(w, h):
    """Wo: (L, D, D); rows are concatenated head outputs -> (L, H, d_k, D)."""
    L, D, _ = w.shape
    dk = D // h
    return w.reshape(L, h, dk, D).astype(MXU_DTYPE)


def transformer_lm_forward(params, src, tgt, src_mask, tgt_mask, n_heads):
    # NOTE: the reference DecoderLayer never consumes encoder_out, so the whole
    # encoder stack (and `src` embedding) is dead w.r.t. the returned logits and
    # is eliminated.  `src` is only used for the shape check below.
    d_model = params["trg_emb"].shape[1]
    B, S = src.shape
    _, T = tgt.shape
    assert S == T, "reference masking (src_mask applied to the decoder stream) requires S == T"
    H = n_heads
    d_k = d_model // H
    pe = params["pe"]

    # Embedding + positional encoding (gather done in XLA); dropout = identity.
    x_tgt = (params["trg_emb"][tgt] * math.sqrt(d_model) + pe[None, :T, :]).astype(jnp.float32)

    # Masks -> additive biases (compare+select once, outside the kernel).
    src_bias = jnp.broadcast_to(
        jnp.where(src_mask == 0, NEG_INF, 0.0).astype(jnp.float32), (B, 1, T))
    tgt_bias = jnp.broadcast_to(
        jnp.where(tgt_mask == 0, NEG_INF, 0.0).astype(jnp.float32), (B, T, T))

    dec = params["dec"]
    L = dec["self_wq"].shape[0]
    d_ff = dec["w1"].shape[2]
    scale = 1.0 / math.sqrt(d_k)

    # Wrapper-side layout plumbing: heads -> leading axis, 1/sqrt(d_k) folded
    # into Wq/bq, weights cast to the MXU operand dtype.
    s_wq, s_bq = _split_heads_proj(dec["self_wq"], dec["self_bq"], H, scale)
    s_wk, s_bk = _split_heads_proj(dec["self_wk"], dec["self_bk"], H)
    s_wv, s_bv = _split_heads_proj(dec["self_wv"], dec["self_bv"], H)
    s_wo = _split_heads_out(dec["self_wo"], H)
    s_bo = dec["self_bo"][:, None, :].astype(jnp.float32)
    c_wq, c_bq = _split_heads_proj(dec["src_wq"], dec["src_bq"], H, scale)
    c_wk, c_bk = _split_heads_proj(dec["src_wk"], dec["src_bk"], H)
    c_wv, c_bv = _split_heads_proj(dec["src_wv"], dec["src_bv"], H)
    c_wo = _split_heads_out(dec["src_wo"], H)
    c_bo = dec["src_bo"][:, None, :].astype(jnp.float32)
    w1 = dec["w1"].astype(MXU_DTYPE)
    b1 = dec["b1"][:, None, :].astype(jnp.float32)
    w2 = dec["w2"].astype(MXU_DTYPE)
    b2 = dec["b2"][:, None, :].astype(jnp.float32)

    # Lane-dense classification head: zero-pad vocab to a multiple of 128.
    # TODO(synk): at realistic vocab sizes, add a vocab grid axis and stream wc
    # in (D, 512..1024) column panels instead of holding the whole head in VMEM.
    wc, bc = params["cls"]["wc"], params["cls"]["bc"]
    V = wc.shape[1]
    Vp = ((V + LANE - 1) // LANE) * LANE
    wc_p = jnp.pad(wc, ((0, 0), (0, Vp - V))).astype(MXU_DTYPE)
    bc_p = jnp.pad(bc, ((0, 0), (0, Vp - V))).astype(jnp.float32)

    dn_g = params["dec_norm"]["g"]
    dn_b = params["dec_norm"]["b"]

    per_batch = [x_tgt, src_bias, tgt_bias]
    per_layer = [dec["ln1_g"], dec["ln1_b"],
                 s_wq, s_bq, s_wk, s_bk, s_wv, s_bv, s_wo, s_bo,
                 dec["ln2_g"], dec["ln2_b"],
                 c_wq, c_bq, c_wk, c_bk, c_wv, c_bv, c_wo, c_bo,
                 dec["ln3_g"], dec["ln3_b"], w1, b1, w2, b2]
    glob = [dn_g, dn_b, wc_p, bc_p]
    args = per_batch + per_layer + glob

    in_specs = ([_batch_spec(a.shape) for a in per_batch]
                + [_layer_spec(a.shape) for a in per_layer]
                + [_global_spec(a) for a in glob])

    # Advisory cost estimate so XLA schedules the surrounding ops sensibly.
    attn_flops = 2 * 4 * T * d_model * d_model + 2 * 2 * H * T * T * d_k
    ffn_flops = 2 * 2 * T * d_model * d_ff
    flops = B * (L * (2 * attn_flops + ffn_flops) + 2 * T * d_model * Vp)
    transc = B * L * 2 * H * T * T
    bytes_accessed = sum(int(a.size) * a.dtype.itemsize for a in args) + B * T * Vp * 4

    logits_padded = pl.pallas_call(
        _decoder_kernel,
        out_shape=jax.ShapeDtypeStruct((B, T, Vp), jnp.float32),
        grid=(B, L),
        in_specs=in_specs,
        out_specs=_batch_spec((B, T, Vp)),
        scratch_shapes=[pltpu.VMEM((T, d_model), jnp.float32)],  # activation carry
        compiler_params=pltpu.CompilerParams(
            dimension_semantics=("parallel", "arbitrary"),   # batch over TCs, layers sequential
            vmem_limit_bytes=32 * 1024 * 1024,
        ),
        cost_estimate=pl.CostEstimate(flops=int(flops),
                                      transcendentals=int(transc),
                                      bytes_accessed=int(bytes_accessed)),
    )(*args)
    return logits_padded[..., :V]


# ------------------------------ parameter setup -------------------------------

def _xavier(key, shape):
    limit = math.sqrt(6.0 / (shape[0] + shape[1]))
    return jax.random.uniform(key, shape, jnp.float32, -limit, limit)


def _positional_encoding(max_len, d_model):
    pos = np.arange(max_len, dtype=np.float32)[:, None]
    div = np.exp(np.arange(0, d_model, 2, dtype=np.float32) *
                 -(math.log(10000.0) / d_model))
    pe = np.zeros((max_len, d_model), np.float32)
    pe[:, 0::2] = np.sin(pos * div)
    pe[:, 1::2] = np.cos(pos * div)
    return jnp.asarray(pe)


def init_params(key, trg_vocab, h, d_model, d_ff, n_layer=1, max_len=64):
    """Decoder-only parameters: the reference's encoder output is never used by
    the DecoderLayer, so no encoder / src-embedding weights are created."""
    ks = jax.random.split(key, 12)

    def sx(k, shape):
        return jnp.stack([_xavier(kk, shape) for kk in jax.random.split(k, n_layer)])

    def zl(n):
        return jnp.zeros((n_layer, n), jnp.float32)

    ones_ln = jnp.ones((n_layer, 1, d_model), jnp.float32)
    zeros_ln = jnp.zeros((n_layer, 1, d_model), jnp.float32)
    dec = dict(
        ln1_g=ones_ln, ln1_b=zeros_ln,
        ln2_g=ones_ln, ln2_b=zeros_ln,
        ln3_g=ones_ln, ln3_b=zeros_ln,
        self_wq=sx(ks[0], (d_model, d_model)), self_bq=zl(d_model),
        self_wk=sx(ks[1], (d_model, d_model)), self_bk=zl(d_model),
        self_wv=sx(ks[2], (d_model, d_model)), self_bv=zl(d_model),
        self_wo=sx(ks[3], (d_model, d_model)), self_bo=zl(d_model),
        src_wq=sx(ks[4], (d_model, d_model)), src_bq=zl(d_model),
        src_wk=sx(ks[5], (d_model, d_model)), src_bk=zl(d_model),
        src_wv=sx(ks[6], (d_model, d_model)), src_bv=zl(d_model),
        src_wo=sx(ks[7], (d_model, d_model)), src_bo=zl(d_model),
        w1=sx(ks[8], (d_model, d_ff)), b1=zl(d_ff),
        w2=sx(ks[9], (d_ff, d_model)), b2=zl(d_model),
    )
    return dict(
        trg_emb=_xavier(ks[10], (trg_vocab, d_model)),
        pe=_positional_encoding(max_len, d_model),
        dec=dec,
        dec_norm=dict(g=jnp.ones((1, d_model), jnp.float32),
                      b=jnp.zeros((1, d_model), jnp.float32)),
        cls=dict(wc=_xavier(ks[11], (d_model, trg_vocab)),
                 bc=jnp.zeros((1, trg_vocab), jnp.float32)),
    )


# ----------------------------------- main --------------------------------------

if __name__ == "__main__":
    B, S, T = 2, 8, 8            # src/tgt lengths equal (required by reference masking)
    H, D_MODEL, D_FF = 4, 32, 64
    SRC_VOCAB, TRG_VOCAB = 50, 40
    N_LAYER = 2                  # exercises the per-layer weight-streaming grid axis

    key = jax.random.PRNGKey(0)
    pkey, skey, tkey = jax.random.split(key, 3)
    params = init_params(pkey, TRG_VOCAB, H, D_MODEL, D_FF, n_layer=N_LAYER)

    src = jax.random.randint(skey, (B, S), 0, SRC_VOCAB)
    tgt = jax.random.randint(tkey, (B, T), 0, TRG_VOCAB)
    src_mask = jnp.ones((B, 1, S), jnp.float32)
    tgt_mask = jnp.broadcast_to(jnp.tril(jnp.ones((T, T), jnp.float32))[None], (B, T, T))

    fwd = jax.jit(functools.partial(transformer_lm_forward, n_heads=H))
    out = fwd(params, src, tgt, src_mask, tgt_mask)
    out = jax.block_until_ready(out)
    assert out.shape == (B, T, TRG_VOCAB), out.shape
    assert bool(jnp.all(jnp.isfinite(out)))
    print("KERNEL_OK")
</pallas_src>

<mosaic_0001>
module attributes {stable_mosaic.version = 11 : i64} {
  func.func @_decoder_kernel(%arg0: i32, %arg1: i32, %arg2: memref<1x8x32xf32, #tpu.memory_space<vmem>>, %arg3: memref<1x1x8xf32, #tpu.memory_space<vmem>>, %arg4: memref<1x8x8xf32, #tpu.memory_space<vmem>>, %arg5: memref<1x1x32xf32, #tpu.memory_space<vmem>>, %arg6: memref<1x1x32xf32, #tpu.memory_space<vmem>>, %arg7: memref<1x4x32x8xbf16, #tpu.memory_space<vmem>>, %arg8: memref<1x4x1x8xf32, #tpu.memory_space<vmem>>, %arg9: memref<1x4x32x8xbf16, #tpu.memory_space<vmem>>, %arg10: memref<1x4x1x8xf32, #tpu.memory_space<vmem>>, %arg11: memref<1x4x32x8xbf16, #tpu.memory_space<vmem>>, %arg12: memref<1x4x1x8xf32, #tpu.memory_space<vmem>>, %arg13: memref<1x4x8x32xbf16, #tpu.memory_space<vmem>>, %arg14: memref<1x1x32xf32, #tpu.memory_space<vmem>>, %arg15: memref<1x1x32xf32, #tpu.memory_space<vmem>>, %arg16: memref<1x1x32xf32, #tpu.memory_space<vmem>>, %arg17: memref<1x4x32x8xbf16, #tpu.memory_space<vmem>>, %arg18: memref<1x4x1x8xf32, #tpu.memory_space<vmem>>, %arg19: memref<1x4x32x8xbf16, #tpu.memory_space<vmem>>, %arg20: memref<1x4x1x8xf32, #tpu.memory_space<vmem>>, %arg21: memref<1x4x32x8xbf16, #tpu.memory_space<vmem>>, %arg22: memref<1x4x1x8xf32, #tpu.memory_space<vmem>>, %arg23: memref<1x4x8x32xbf16, #tpu.memory_space<vmem>>, %arg24: memref<1x1x32xf32, #tpu.memory_space<vmem>>, %arg25: memref<1x1x32xf32, #tpu.memory_space<vmem>>, %arg26: memref<1x1x32xf32, #tpu.memory_space<vmem>>, %arg27: memref<1x32x64xbf16, #tpu.memory_space<vmem>>, %arg28: memref<1x1x64xf32, #tpu.memory_space<vmem>>, %arg29: memref<1x64x32xbf16, #tpu.memory_space<vmem>>, %arg30: memref<1x1x32xf32, #tpu.memory_space<vmem>>, %arg31: memref<1x32xf32, #tpu.memory_space<vmem>>, %arg32: memref<1x32xf32, #tpu.memory_space<vmem>>, %arg33: memref<32x128xbf16, #tpu.memory_space<vmem>>, %arg34: memref<1x128xf32, #tpu.memory_space<vmem>>, %arg35: memref<1x8x128xf32, #tpu.memory_space<vmem>>, %arg36: memref<8x32xf32, #tpu.memory_space<vmem>>) attributes {dimension_semantics = [#tpu.dimension_semantics<parallel>, #tpu.dimension_semantics<arbitrary>], iteration_bounds = array<i64: 2, 2>, scalar_prefetch = 0 : i64, scratch_operands = 1 : i64, tpu.core_type = #tpu.core_type<tc>, window_params = [{transform_indices = @transform_0, window_bounds = array<i64: 1, 8, 32>}, {transform_indices = @transform_1, window_bounds = array<i64: 1, 1, 8>}, {transform_indices = @transform_2, window_bounds = array<i64: 1, 8, 8>}, {transform_indices = @transform_3, window_bounds = array<i64: 1, 1, 32>}, {transform_indices = @transform_4, window_bounds = array<i64: 1, 1, 32>}, {transform_indices = @transform_5, window_bounds = array<i64: 1, 4, 32, 8>}, {transform_indices = @transform_6, window_bounds = array<i64: 1, 4, 1, 8>}, {transform_indices = @transform_7, window_bounds = array<i64: 1, 4, 32, 8>}, {transform_indices = @transform_8, window_bounds = array<i64: 1, 4, 1, 8>}, {transform_indices = @transform_9, window_bounds = array<i64: 1, 4, 32, 8>}, {transform_indices = @transform_10, window_bounds = array<i64: 1, 4, 1, 8>}, {transform_indices = @transform_11, window_bounds = array<i64: 1, 4, 8, 32>}, {transform_indices = @transform_12, window_bounds = array<i64: 1, 1, 32>}, {transform_indices = @transform_13, window_bounds = array<i64: 1, 1, 32>}, {transform_indices = @transform_14, window_bounds = array<i64: 1, 1, 32>}, {transform_indices = @transform_15, window_bounds = array<i64: 1, 4, 32, 8>}, {transform_indices = @transform_16, window_bounds = array<i64: 1, 4, 1, 8>}, {transform_indices = @transform_17, window_bounds = array<i64: 1, 4, 32, 8>}, {transform_indices = @transform_18, window_bounds = array<i64: 1, 4, 1, 8>}, {transform_indices = @transform_19, window_bounds = array<i64: 1, 4, 32, 8>}, {transform_indices = @transform_20, window_bounds = array<i64: 1, 4, 1, 8>}, {transform_indices = @transform_21, window_bounds = array<i64: 1, 4, 8, 32>}, {transform_indices = @transform_22, window_bounds = array<i64: 1, 1, 32>}, {transform_indices = @transform_23, window_bounds = array<i64: 1, 1, 32>}, {transform_indices = @transform_24, window_bounds = array<i64: 1, 1, 32>}, {transform_indices = @transform_25, window_bounds = array<i64: 1, 32, 64>}, {transform_indices = @transform_26, window_bounds = array<i64: 1, 1, 64>}, {transform_indices = @transform_27, window_bounds = array<i64: 1, 64, 32>}, {transform_indices = @transform_28, window_bounds = array<i64: 1, 1, 32>}, {pipeline_mode = #tpu.pipeline_mode<synchronous>, transform_indices = @transform_29, window_bounds = array<i64: 1, 32>}, {pipeline_mode = #tpu.pipeline_mode<synchronous>, transform_indices = @transform_30, window_bounds = array<i64: 1, 32>}, {pipeline_mode = #tpu.pipeline_mode<synchronous>, transform_indices = @transform_31, window_bounds = array<i64: 32, 128>}, {pipeline_mode = #tpu.pipeline_mode<synchronous>, transform_indices = @transform_32, window_bounds = array<i64: 1, 128>}, {transform_indices = @transform_33, window_bounds = array<i64: 1, 8, 128>}]} {
    %c0_i32 = arith.constant 0 : i32
    %0 = arith.cmpi eq, %arg1, %c0_i32 : i32
    %1 = arith.extui %0 : i1 to i32
    %c0_i32_0 = arith.constant 0 : i32
    %2 = arith.cmpi ne, %1, %c0_i32_0 : i32
    scf.if %2 {
      %c0_138 = arith.constant 0 : index
      %c0_139 = arith.constant 0 : index
      %c0_140 = arith.constant 0 : index
      %211 = vector.load %arg2[%c0_138, %c0_139, %c0_140] : memref<1x8x32xf32, #tpu.memory_space<vmem>>, vector<1x8x32xf32>
      %212 = vector.shape_cast %211 : vector<1x8x32xf32> to vector<8x32xf32>
      %c0_141 = arith.constant 0 : index
      %c0_142 = arith.constant 0 : index
      %213 = vector.load %arg36[%c0_141, %c0_142] : memref<8x32xf32, #tpu.memory_space<vmem>>, vector<8x32xf32>
      tpu.vector_store %arg36[%c0_141, %c0_142], %212 {strides = array<i32>} : memref<8x32xf32, #tpu.memory_space<vmem>>, vector<8x32xf32>,
    } else {
    }
    %c0 = arith.constant 0 : index
    %c0_1 = arith.constant 0 : index
    %c0_2 = arith.constant 0 : index
    %3 = vector.load %arg3[%c0, %c0_1, %c0_2] : memref<1x1x8xf32, #tpu.memory_space<vmem>>, vector<1x1x8xf32>
    %4 = vector.shape_cast %3 : vector<1x1x8xf32> to vector<1x8xf32>
    %c0_3 = arith.constant 0 : index
    %c0_4 = arith.constant 0 : index
    %c0_5 = arith.constant 0 : index
    %5 = vector.load %arg4[%c0_3, %c0_4, %c0_5] : memref<1x8x8xf32, #tpu.memory_space<vmem>>, vector<1x8x8xf32>
    %6 = vector.shape_cast %5 : vector<1x8x8xf32> to vector<8x8xf32>
    %c0_6 = arith.constant 0 : index
    %c0_7 = arith.constant 0 : index
    %7 = vector.load %arg36[%c0_6, %c0_7] : memref<8x32xf32, #tpu.memory_space<vmem>>, vector<8x32xf32>
    %c0_8 = arith.constant 0 : index
    %c0_9 = arith.constant 0 : index
    %c0_10 = arith.constant 0 : index
    %8 = vector.load %arg5[%c0_8, %c0_9, %c0_10] : memref<1x1x32xf32, #tpu.memory_space<vmem>>, vector<1x1x32xf32>
    %9 = vector.shape_cast %8 : vector<1x1x32xf32> to vector<1x32xf32>
    %c0_11 = arith.constant 0 : index
    %c0_12 = arith.constant 0 : index
    %c0_13 = arith.constant 0 : index
    %10 = vector.load %arg6[%c0_11, %c0_12, %c0_13] : memref<1x1x32xf32, #tpu.memory_space<vmem>>, vector<1x1x32xf32>
    %11 = vector.shape_cast %10 : vector<1x1x32xf32> to vector<1x32xf32>
    %cst = arith.constant dense<0.000000e+00> : vector<8xf32>
    %12 = vector.multi_reduction <add>, %7, %cst [1] : vector<8x32xf32> to vector<8xf32>
    %13 = vector.shape_cast %12 : vector<8xf32> to vector<8x1xf32>
    %cst_14 = arith.constant 3.200000e+01 : f32
    %14 = vector.broadcast %cst_14 : f32 to vector<8x1xf32>
    %15 = arith.divf %13, %14 : vector<8x1xf32>
    %16 = vector.broadcast %15 : vector<8x1xf32> to vector<8x32xf32>
    %17 = arith.subf %7, %16 : vector<8x32xf32>
    %18 = arith.mulf %17, %17 : vector<8x32xf32>
    %cst_15 = arith.constant dense<0.000000e+00> : vector<8xf32>
    %19 = vector.multi_reduction <add>, %18, %cst_15 [1] : vector<8x32xf32> to vector<8xf32>
    %20 = vector.shape_cast %19 : vector<8xf32> to vector<8x1xf32>
    %cst_16 = arith.constant 3.100000e+01 : f32
    %21 = vector.broadcast %cst_16 : f32 to vector<8x1xf32>
    %22 = arith.divf %20, %21 : vector<8x1xf32>
    %23 = vector.broadcast %9 : vector<1x32xf32> to vector<8x32xf32>
    %24 = arith.mulf %23, %17 : vector<8x32xf32>
    %25 = math.sqrt %22 : vector<8x1xf32>
    %cst_17 = arith.constant 9.99999997E-7 : f32
    %26 = vector.broadcast %cst_17 : f32 to vector<8x1xf32>
    %27 = arith.addf %25, %26 : vector<8x1xf32>
    %28 = vector.broadcast %27 : vector<8x1xf32> to vector<8x32xf32>
    %29 = arith.divf %24, %28 : vector<8x32xf32>
    %30 = vector.broadcast %11 : vector<1x32xf32> to vector<8x32xf32>
    %31 = arith.addf %29, %30 : vector<8x32xf32>
    %c0_18 = arith.constant 0 : index
    %c0_19 = arith.constant 0 : index
    %c0_20 = arith.constant 0 : index
    %c0_21 = arith.constant 0 : index
    %32 = vector.load %arg7[%c0_18, %c0_19, %c0_20, %c0_21] : memref<1x4x32x8xbf16, #tpu.memory_space<vmem>>, vector<1x4x32x8xbf16>
    %33 = vector.shape_cast %32 : vector<1x4x32x8xbf16> to vector<4x32x8xbf16>
    %c0_22 = arith.constant 0 : index
    %c0_23 = arith.constant 0 : index
    %c0_24 = arith.constant 0 : index
    %c0_25 = arith.constant 0 : index
    %34 = vector.load %arg8[%c0_22, %c0_23, %c0_24, %c0_25] : memref<1x4x1x8xf32, #tpu.memory_space<vmem>>, vector<1x4x1x8xf32>
    %35 = vector.shape_cast %34 : vector<1x4x1x8xf32> to vector<4x1x8xf32>
    %c0_26 = arith.constant 0 : index
    %c0_27 = arith.constant 0 : index
    %c0_28 = arith.constant 0 : index
    %c0_29 = arith.constant 0 : index
    %36 = vector.load %arg9[%c0_26, %c0_27, %c0_28, %c0_29] : memref<1x4x32x8xbf16, #tpu.memory_space<vmem>>, vector<1x4x32x8xbf16>
    %37 = vector.shape_cast %36 : vector<1x4x32x8xbf16> to vector<4x32x8xbf16>
    %c0_30 = arith.constant 0 : index
    %c0_31 = arith.constant 0 : index
    %c0_32 = arith.constant 0 : index
    %c0_33 = arith.constant 0 : index
    %38 = vector.load %arg10[%c0_30, %c0_31, %c0_32, %c0_33] : memref<1x4x1x8xf32, #tpu.memory_space<vmem>>, vector<1x4x1x8xf32>
    %39 = vector.shape_cast %38 : vector<1x4x1x8xf32> to vector<4x1x8xf32>
    %c0_34 = arith.constant 0 : index
    %c0_35 = arith.constant 0 : index
    %c0_36 = arith.constant 0 : index
    %c0_37 = arith.constant 0 : index
    %40 = vector.load %arg11[%c0_34, %c0_35, %c0_36, %c0_37] : memref<1x4x32x8xbf16, #tpu.memory_space<vmem>>, vector<1x4x32x8xbf16>
    %41 = vector.shape_cast %40 : vector<1x4x32x8xbf16> to vector<4x32x8xbf16>
    %c0_38 = arith.constant 0 : index
    %c0_39 = arith.constant 0 : index
    %c0_40 = arith.constant 0 : index
    %c0_41 = arith.constant 0 : index
    %42 = vector.load %arg12[%c0_38, %c0_39, %c0_40, %c0_41] : memref<1x4x1x8xf32, #tpu.memory_space<vmem>>, vector<1x4x1x8xf32>
    %43 = vector.shape_cast %42 : vector<1x4x1x8xf32> to vector<4x1x8xf32>
    %c0_42 = arith.constant 0 : index
    %c0_43 = arith.constant 0 : index
    %c0_44 = arith.constant 0 : index
    %c0_45 = arith.constant 0 : index
    %44 = vector.load %arg13[%c0_42, %c0_43, %c0_44, %c0_45] : memref<1x4x8x32xbf16, #tpu.memory_space<vmem>>, vector<1x4x8x32xbf16>
    %45 = vector.shape_cast %44 : vector<1x4x8x32xbf16> to vector<4x8x32xbf16>
    %c0_46 = arith.constant 0 : index
    %c0_47 = arith.constant 0 : index
    %c0_48 = arith.constant 0 : index
    %46 = vector.load %arg14[%c0_46, %c0_47, %c0_48] : memref<1x1x32xf32, #tpu.memory_space<vmem>>, vector<1x1x32xf32>
    %47 = vector.shape_cast %46 : vector<1x1x32xf32> to vector<1x32xf32>
    %48 = arith.truncf %31 : vector<8x32xf32> to vector<8x32xbf16>
    %49 = vector.shape_cast %48 : vector<8x32xbf16> to vector<1x8x32xbf16>
    %50 = vector.shape_cast %49 : vector<1x8x32xbf16> to vector<1x8x32xbf16>
    %51 = vector.broadcast %50 : vector<1x8x32xbf16> to vector<4x8x32xbf16>
    "tpu.trace_start"() <{level = 10 : i32, message = "hsd,hdk->hsk"}> : () -> ()
    %cst_49 = arith.constant dense<0.000000e+00> : vector<4x8x8xf32>
    %52 = tpu.matmul %51, %33, %cst_49 {dimension_numbers = #tpu.dot_dimension_numbers<[2], [1], [1], [2], [0, 0, 0, 1, 1, 2], [0], [0]>} : vector<4x8x32xbf16>, vector<4x32x8xbf16>, vector<4x8x8xf32> -> vector<4x8x8xf32>
    "tpu.trace_stop"() : () -> ()
    %53 = vector.broadcast %35 : vector<4x1x8xf32> to vector<4x8x8xf32>
    %54 = arith.addf %52, %53 : vector<4x8x8xf32>
    "tpu.trace_start"() <{level = 10 : i32, message = "hsd,hdk->hsk"}> : () -> ()
    %cst_50 = arith.constant dense<0.000000e+00> : vector<4x8x8xf32>
    %55 = tpu.matmul %51, %37, %cst_50 {dimension_numbers = #tpu.dot_dimension_numbers<[2], [1], [1], [2], [0, 0, 0, 1, 1, 2], [0], [0]>} : vector<4x8x32xbf16>, vector<4x32x8xbf16>, vector<4x8x8xf32> -> vector<4x8x8xf32>
    "tpu.trace_stop"() : () -> ()
    %56 = vector.broadcast %39 : vector<4x1x8xf32> to vector<4x8x8xf32>
    %57 = arith.addf %55, %56 : vector<4x8x8xf32>
    "tpu.trace_start"() <{level = 10 : i32, message = "hsd,hdk->hsk"}> : () -> ()
    %cst_51 = arith.constant dense<0.000000e+00> : vector<4x8x8xf32>
    %58 = tpu.matmul %51, %41, %cst_51 {dimension_numbers = #tpu.dot_dimension_numbers<[2], [1], [1], [2], [0, 0, 0, 1, 1, 2], [0], [0]>} : vector<4x8x32xbf16>, vector<4x32x8xbf16>, vector<4x8x8xf32> -> vector<4x8x8xf32>
    "tpu.trace_stop"() : () -> ()
    %59 = vector.broadcast %43 : vector<4x1x8xf32> to vector<4x8x8xf32>
    %60 = arith.addf %58, %59 : vector<4x8x8xf32>
    %61 = arith.truncf %54 : vector<4x8x8xf32> to vector<4x8x8xbf16>
    %62 = arith.truncf %57 : vector<4x8x8xf32> to vector<4x8x8xbf16>
    "tpu.trace_start"() <{level = 10 : i32, message = "hqc,hkc->hqk"}> : () -> ()
    %cst_52 = arith.constant dense<0.000000e+00> : vector<4x8x8xf32>
    %63 = tpu.matmul %61, %62, %cst_52 {dimension_numbers = #tpu.dot_dimension_numbers<[2], [2], [1], [1], [0, 0, 0, 1, 1, 1], [0], [0]>} : vector<4x8x8xbf16>, vector<4x8x8xbf16>, vector<4x8x8xf32> -> vector<4x8x8xf32>
    "tpu.trace_stop"() : () -> ()
    %64 = vector.shape_cast %6 : vector<8x8xf32> to vector<1x8x8xf32>
    %65 = vector.broadcast %64 : vector<1x8x8xf32> to vector<4x8x8xf32>
    %66 = arith.addf %63, %65 : vector<4x8x8xf32>
    %cst_53 = arith.constant dense<0xFF800000> : vector<4x8xf32>
    %67 = vector.multi_reduction <maximumf>, %66, %cst_53 [2] : vector<4x8x8xf32> to vector<4x8xf32>
    %68 = vector.shape_cast %67 : vector<4x8xf32> to vector<4x8x1xf32>
    %69 = vector.broadcast %68 : vector<4x8x1xf32> to vector<4x8x8xf32>
    %70 = arith.subf %66, %69 : vector<4x8x8xf32>
    %71 = math.exp %70 : vector<4x8x8xf32>
    %cst_54 = arith.constant dense<0.000000e+00> : vector<4x8xf32>
    %72 = vector.multi_reduction <add>, %71, %cst_54 [2] : vector<4x8x8xf32> to vector<4x8xf32>
    %73 = vector.shape_cast %72 : vector<4x8xf32> to vector<4x8x1xf32>
    %74 = tpu.reciprocal %73 {approx = true} : vector<4x8x1xf32> -> vector<4x8x1xf32>
    %75 = vector.broadcast %74 : vector<4x8x1xf32> to vector<4x8x8xf32>
    %76 = arith.mulf %71, %75 : vector<4x8x8xf32>
    %77 = arith.truncf %76 : vector<4x8x8xf32> to vector<4x8x8xbf16>
    %78 = arith.truncf %60 : vector<4x8x8xf32> to vector<4x8x8xbf16>
    "tpu.trace_start"() <{level = 10 : i32, message = "hqk,hkc->hqc"}> : () -> ()
    %cst_55 = arith.constant dense<0.000000e+00> : vector<4x8x8xf32>
    %79 = tpu.matmul %77, %78, %cst_55 {dimension_numbers = #tpu.dot_dimension_numbers<[2], [1], [1], [2], [0, 0, 0, 1, 1, 2], [0], [0]>} : vector<4x8x8xbf16>, vector<4x8x8xbf16>, vector<4x8x8xf32> -> vector<4x8x8xf32>
    "tpu.trace_stop"() : () -> ()
    %80 = arith.truncf %79 : vector<4x8x8xf32> to vector<4x8x8xbf16>
    "tpu.trace_start"() <{level = 10 : i32, message = "hqc,hcd->hqd"}> : () -> ()
    %cst_56 = arith.constant dense<0.000000e+00> : vector<4x8x32xf32>
    %81 = tpu.matmul %80, %45, %cst_56 {dimension_numbers = #tpu.dot_dimension_numbers<[2], [1], [1], [2], [0, 0, 0, 1, 1, 2], [0], [0]>} : vector<4x8x8xbf16>, vector<4x8x32xbf16>, vector<4x8x32xf32> -> vector<4x8x32xf32>
    "tpu.trace_stop"() : () -> ()
    %cst_57 = arith.constant dense<0.000000e+00> : vector<8x32xf32>
    %82 = vector.multi_reduction <add>, %81, %cst_57 [0] : vector<4x8x32xf32> to vector<8x32xf32>
    %83 = vector.broadcast %47 : vector<1x32xf32> to vector<8x32xf32>
    %84 = arith.addf %82, %83 : vector<8x32xf32>
    %85 = arith.addf %7, %84 : vector<8x32xf32>
    %c0_58 = arith.constant 0 : index
    %c0_59 = arith.constant 0 : index
    %c0_60 = arith.constant 0 : index
    %86 = vector.load %arg15[%c0_58, %c0_59, %c0_60] : memref<1x1x32xf32, #tpu.memory_space<vmem>>, vector<1x1x32xf32>
    %87 = vector.shape_cast %86 : vector<1x1x32xf32> to vector<1x32xf32>
    %c0_61 = arith.constant 0 : index
    %c0_62 = arith.constant 0 : index
    %c0_63 = arith.constant 0 : index
    %88 = vector.load %arg16[%c0_61, %c0_62, %c0_63] : memref<1x1x32xf32, #tpu.memory_space<vmem>>, vector<1x1x32xf32>
    %89 = vector.shape_cast %88 : vector<1x1x32xf32> to vector<1x32xf32>
    %cst_64 = arith.constant dense<0.000000e+00> : vector<8xf32>
    %90 = vector.multi_reduction <add>, %85, %cst_64 [1] : vector<8x32xf32> to vector<8xf32>
    %91 = vector.shape_cast %90 : vector<8xf32> to vector<8x1xf32>
    %cst_65 = arith.constant 3.200000e+01 : f32
    %92 = vector.broadcast %cst_65 : f32 to vector<8x1xf32>
    %93 = arith.divf %91, %92 : vector<8x1xf32>
    %94 = vector.broadcast %93 : vector<8x1xf32> to vector<8x32xf32>
    %95 = arith.subf %85, %94 : vector<8x32xf32>
    %96 = arith.mulf %95, %95 : vector<8x32xf32>
    %cst_66 = arith.constant dense<0.000000e+00> : vector<8xf32>
    %97 = vector.multi_reduction <add>, %96, %cst_66 [1] : vector<8x32xf32> to vector<8xf32>
    %98 = vector.shape_cast %97 : vector<8xf32> to vector<8x1xf32>
    %cst_67 = arith.constant 3.100000e+01 : f32
    %99 = vector.broadcast %cst_67 : f32 to vector<8x1xf32>
    %100 = arith.divf %98, %99 : vector<8x1xf32>
    %101 = vector.broadcast %87 : vector<1x32xf32> to vector<8x32xf32>
    %102 = arith.mulf %101, %95 : vector<8x32xf32>
    %103 = math.sqrt %100 : vector<8x1xf32>
    %cst_68 = arith.constant 9.99999997E-7 : f32
    %104 = vector.broadcast %cst_68 : f32 to vector<8x1xf32>
    %105 = arith.addf %103, %104 : vector<8x1xf32>
    %106 = vector.broadcast %105 : vector<8x1xf32> to vector<8x32xf32>
    %107 = arith.divf %102, %106 : vector<8x32xf32>
    %108 = vector.broadcast %89 : vector<1x32xf32> to vector<8x32xf32>
    %109 = arith.addf %107, %108 : vector<8x32xf32>
    %c0_69 = arith.constant 0 : index
    %c0_70 = arith.constant 0 : index
    %c0_71 = arith.constant 0 : index
    %c0_72 = arith.constant 0 : index
    %110 = vector.load %arg17[%c0_69, %c0_70, %c0_71, %c0_72] : memref<1x4x32x8xbf16, #tpu.memory_space<vmem>>, vector<1x4x32x8xbf16>
    %111 = vector.shape_cast %110 : vector<1x4x32x8xbf16> to vector<4x32x8xbf16>
    %c0_73 = arith.constant 0 : index
    %c0_74 = arith.constant 0 : index
    %c0_75 = arith.constant 0 : index
    %c0_76 = arith.constant 0 : index
    %112 = vector.load %arg18[%c0_73, %c0_74, %c0_75, %c0_76] : memref<1x4x1x8xf32, #tpu.memory_space<vmem>>, vector<1x4x1x8xf32>
    %113 = vector.shape_cast %112 : vector<1x4x1x8xf32> to vector<4x1x8xf32>
    %c0_77 = arith.constant 0 : index
    %c0_78 = arith.constant 0 : index
    %c0_79 = arith.constant 0 : index
    %c0_80 = arith.constant 0 : index
    %114 = vector.load %arg19[%c0_77, %c0_78, %c0_79, %c0_80] : memref<1x4x32x8xbf16, #tpu.memory_space<vmem>>, vector<1x4x32x8xbf16>
    %115 = vector.shape_cast %114 : vector<1x4x32x8xbf16> to vector<4x32x8xbf16>
    %c0_81 = arith.constant 0 : index
    %c0_82 = arith.constant 0 : index
    %c0_83 = arith.constant 0 : index
    %c0_84 = arith.constant 0 : index
    %116 = vector.load %arg20[%c0_81, %c0_82, %c0_83, %c0_84] : memref<1x4x1x8xf32, #tpu.memory_space<vmem>>, vector<1x4x1x8xf32>
    %117 = vector.shape_cast %116 : vector<1x4x1x8xf32> to vector<4x1x8xf32>
    %c0_85 = arith.constant 0 : index
    %c0_86 = arith.constant 0 : index
    %c0_87 = arith.constant 0 : index
    %c0_88 = arith.constant 0 : index
    %118 = vector.load %arg21[%c0_85, %c0_86, %c0_87, %c0_88] : memref<1x4x32x8xbf16, #tpu.memory_space<vmem>>, vector<1x4x32x8xbf16>
    %119 = vector.shape_cast %118 : vector<1x4x32x8xbf16> to vector<4x32x8xbf16>
    %c0_89 = arith.constant 0 : index
    %c0_90 = arith.constant 0 : index
    %c0_91 = arith.constant 0 : index
    %c0_92 = arith.constant 0 : index
    %120 = vector.load %arg22[%c0_89, %c0_90, %c0_91, %c0_92] : memref<1x4x1x8xf32, #tpu.memory_space<vmem>>, vector<1x4x1x8xf32>
    %121 = vector.shape_cast %120 : vector<1x4x1x8xf32> to vector<4x1x8xf32>
    %c0_93 = arith.constant 0 : index
    %c0_94 = arith.constant 0 : index
    %c0_95 = arith.constant 0 : index
    %c0_96 = arith.constant 0 : index
    %122 = vector.load %arg23[%c0_93, %c0_94, %c0_95, %c0_96] : memref<1x4x8x32xbf16, #tpu.memory_space<vmem>>, vector<1x4x8x32xbf16>
    %123 = vector.shape_cast %122 : vector<1x4x8x32xbf16> to vector<4x8x32xbf16>
    %c0_97 = arith.constant 0 : index
    %c0_98 = arith.constant 0 : index
    %c0_99 = arith.constant 0 : index
    %124 = vector.load %arg24[%c0_97, %c0_98, %c0_99] : memref<1x1x32xf32, #tpu.memory_space<vmem>>, vector<1x1x32xf32>
    %125 = vector.shape_cast %124 : vector<1x1x32xf32> to vector<1x32xf32>
    %126 = arith.truncf %109 : vector<8x32xf32> to vector<8x32xbf16>
    %127 = vector.shape_cast %126 : vector<8x32xbf16> to vector<1x8x32xbf16>
    %128 = vector.shape_cast %127 : vector<1x8x32xbf16> to vector<1x8x32xbf16>
    %129 = vector.broadcast %128 : vector<1x8x32xbf16> to vector<4x8x32xbf16>
    "tpu.trace_start"() <{level = 10 : i32, message = "hsd,hdk->hsk"}> : () -> ()
    %cst_100 = arith.constant dense<0.000000e+00> : vector<4x8x8xf32>
    %130 = tpu.matmul %129, %111, %cst_100 {dimension_numbers = #tpu.dot_dimension_numbers<[2], [1], [1], [2], [0, 0, 0, 1, 1, 2], [0], [0]>} : vector<4x8x32xbf16>, vector<4x32x8xbf16>, vector<4x8x8xf32> -> vector<4x8x8xf32>
    "tpu.trace_stop"() : () -> ()
    %131 = vector.broadcast %113 : vector<4x1x8xf32> to vector<4x8x8xf32>
    %132 = arith.addf %130, %131 : vector<4x8x8xf32>
    "tpu.trace_start"() <{level = 10 : i32, message = "hsd,hdk->hsk"}> : () -> ()
    %cst_101 = arith.constant dense<0.000000e+00> : vector<4x8x8xf32>
    %133 = tpu.matmul %129, %115, %cst_101 {dimension_numbers = #tpu.dot_dimension_numbers<[2], [1], [1], [2], [0, 0, 0, 1, 1, 2], [0], [0]>} : vector<4x8x32xbf16>, vector<4x32x8xbf16>, vector<4x8x8xf32> -> vector<4x8x8xf32>
    "tpu.trace_stop"() : () -> ()
    %134 = vector.broadcast %117 : vector<4x1x8xf32> to vector<4x8x8xf32>
    %135 = arith.addf %133, %134 : vector<4x8x8xf32>
    "tpu.trace_start"() <{level = 10 : i32, message = "hsd,hdk->hsk"}> : () -> ()
    %cst_102 = arith.constant dense<0.000000e+00> : vector<4x8x8xf32>
    %136 = tpu.matmul %129, %119, %cst_102 {dimension_numbers = #tpu.dot_dimension_numbers<[2], [1], [1], [2], [0, 0, 0, 1, 1, 2], [0], [0]>} : vector<4x8x32xbf16>, vector<4x32x8xbf16>, vector<4x8x8xf32> -> vector<4x8x8xf32>
    "tpu.trace_stop"() : () -> ()
    %137 = vector.broadcast %121 : vector<4x1x8xf32> to vector<4x8x8xf32>
    %138 = arith.addf %136, %137 : vector<4x8x8xf32>
    %139 = arith.truncf %132 : vector<4x8x8xf32> to vector<4x8x8xbf16>
    %140 = arith.truncf %135 : vector<4x8x8xf32> to vector<4x8x8xbf16>
    "tpu.trace_start"() <{level = 10 : i32, message = "hqc,hkc->hqk"}> : () -> ()
    %cst_103 = arith.constant dense<0.000000e+00> : vector<4x8x8xf32>
    %141 = tpu.matmul %139, %140, %cst_103 {dimension_numbers = #tpu.dot_dimension_numbers<[2], [2], [1], [1], [0, 0, 0, 1, 1, 1], [0], [0]>} : vector<4x8x8xbf16>, vector<4x8x8xbf16>, vector<4x8x8xf32> -> vector<4x8x8xf32>
    "tpu.trace_stop"() : () -> ()
    %142 = vector.shape_cast %4 : vector<1x8xf32> to vector<1x1x8xf32>
    %143 = vector.broadcast %142 : vector<1x1x8xf32> to vector<4x8x8xf32>
    %144 = arith.addf %141, %143 : vector<4x8x8xf32>
    %cst_104 = arith.constant dense<0xFF800000> : vector<4x8xf32>
    %145 = vector.multi_reduction <maximumf>, %144, %cst_104 [2] : vector<4x8x8xf32> to vector<4x8xf32>
    %146 = vector.shape_cast %145 : vector<4x8xf32> to vector<4x8x1xf32>
    %147 = vector.broadcast %146 : vector<4x8x1xf32> to vector<4x8x8xf32>
    %148 = arith.subf %144, %147 : vector<4x8x8xf32>
    %149 = math.exp %148 : vector<4x8x8xf32>
    %cst_105 = arith.constant dense<0.000000e+00> : vector<4x8xf32>
    %150 = vector.multi_reduction <add>, %149, %cst_105 [2] : vector<4x8x8xf32> to vector<4x8xf32>
    %151 = vector.shape_cast %150 : vector<4x8xf32> to vector<4x8x1xf32>
    %152 = tpu.reciprocal %151 {approx = true} : vector<4x8x1xf32> -> vector<4x8x1xf32>
    %153 = vector.broadcast %152 : vector<4x8x1xf32> to vector<4x8x8xf32>
    %154 = arith.mulf %149, %153 : vector<4x8x8xf32>
    %155 = arith.truncf %154 : vector<4x8x8xf32> to vector<4x8x8xbf16>
    %156 = arith.truncf %138 : vector<4x8x8xf32> to vector<4x8x8xbf16>
    "tpu.trace_start"() <{level = 10 : i32, message = "hqk,hkc->hqc"}> : () -> ()
    %cst_106 = arith.constant dense<0.000000e+00> : vector<4x8x8xf32>
    %157 = tpu.matmul %155, %156, %cst_106 {dimension_numbers = #tpu.dot_dimension_numbers<[2], [1], [1], [2], [0, 0, 0, 1, 1, 2], [0], [0]>} : vector<4x8x8xbf16>, vector<4x8x8xbf16>, vector<4x8x8xf32> -> vector<4x8x8xf32>
    "tpu.trace_stop"() : () -> ()
    %158 = arith.truncf %157 : vector<4x8x8xf32> to vector<4x8x8xbf16>
    "tpu.trace_start"() <{level = 10 : i32, message = "hqc,hcd->hqd"}> : () -> ()
    %cst_107 = arith.constant dense<0.000000e+00> : vector<4x8x32xf32>
    %159 = tpu.matmul %158, %123, %cst_107 {dimension_numbers = #tpu.dot_dimension_numbers<[2], [1], [1], [2], [0, 0, 0, 1, 1, 2], [0], [0]>} : vector<4x8x8xbf16>, vector<4x8x32xbf16>, vector<4x8x32xf32> -> vector<4x8x32xf32>
    "tpu.trace_stop"() : () -> ()
    %cst_108 = arith.constant dense<0.000000e+00> : vector<8x32xf32>
    %160 = vector.multi_reduction <add>, %159, %cst_108 [0] : vector<4x8x32xf32> to vector<8x32xf32>
    %161 = vector.broadcast %125 : vector<1x32xf32> to vector<8x32xf32>
    %162 = arith.addf %160, %161 : vector<8x32xf32>
    %163 = arith.addf %85, %162 : vector<8x32xf32>
    %c0_109 = arith.constant 0 : index
    %c0_110 = arith.constant 0 : index
    %c0_111 = arith.constant 0 : index
    %164 = vector.load %arg25[%c0_109, %c0_110, %c0_111] : memref<1x1x32xf32, #tpu.memory_space<vmem>>, vector<1x1x32xf32>
    %165 = vector.shape_cast %164 : vector<1x1x32xf32> to vector<1x32xf32>
    %c0_112 = arith.constant 0 : index
    %c0_113 = arith.constant 0 : index
    %c0_114 = arith.constant 0 : index
    %166 = vector.load %arg26[%c0_112, %c0_113, %c0_114] : memref<1x1x32xf32, #tpu.memory_space<vmem>>, vector<1x1x32xf32>
    %167 = vector.shape_cast %166 : vector<1x1x32xf32> to vector<1x32xf32>
    %cst_115 = arith.constant dense<0.000000e+00> : vector<8xf32>
    %168 = vector.multi_reduction <add>, %163, %cst_115 [1] : vector<8x32xf32> to vector<8xf32>
    %169 = vector.shape_cast %168 : vector<8xf32> to vector<8x1xf32>
    %cst_116 = arith.constant 3.200000e+01 : f32
    %170 = vector.broadcast %cst_116 : f32 to vector<8x1xf32>
    %171 = arith.divf %169, %170 : vector<8x1xf32>
    %172 = vector.broadcast %171 : vector<8x1xf32> to vector<8x32xf32>
    %173 = arith.subf %163, %172 : vector<8x32xf32>
    %174 = arith.mulf %173, %173 : vector<8x32xf32>
    %cst_117 = arith.constant dense<0.000000e+00> : vector<8xf32>
    %175 = vector.multi_reduction <add>, %174, %cst_117 [1] : vector<8x32xf32> to vector<8xf32>
    %176 = vector.shape_cast %175 : vector<8xf32> to vector<8x1xf32>
    %cst_118 = arith.constant 3.100000e+01 : f32
    %177 = vector.broadcast %cst_118 : f32 to vector<8x1xf32>
    %178 = arith.divf %176, %177 : vector<8x1xf32>
    %179 = vector.broadcast %165 : vector<1x32xf32> to vector<8x32xf32>
    %180 = arith.mulf %179, %173 : vector<8x32xf32>
    %181 = math.sqrt %178 : vector<8x1xf32>
    %cst_119 = arith.constant 9.99999997E-7 : f32
    %182 = vector.broadcast %cst_119 : f32 to vector<8x1xf32>
    %183 = arith.addf %181, %182 : vector<8x1xf32>
    %184 = vector.broadcast %183 : vector<8x1xf32> to vector<8x32xf32>
    %185 = arith.divf %180, %184 : vector<8x32xf32>
    %186 = vector.broadcast %167 : vector<1x32xf32> to vector<8x32xf32>
    %187 = arith.addf %185, %186 : vector<8x32xf32>
    %c0_120 = arith.constant 0 : index
    %c0_121 = arith.constant 0 : index
    %c0_122 = arith.constant 0 : index
    %188 = vector.load %arg27[%c0_120, %c0_121, %c0_122] : memref<1x32x64xbf16, #tpu.memory_space<vmem>>, vector<1x32x64xbf16>
    %189 = vector.shape_cast %188 : vector<1x32x64xbf16> to vector<32x64xbf16>
    %c0_123 = arith.constant 0 : index
    %c0_124 = arith.constant 0 : index
    %c0_125 = arith.constant 0 : index
    %190 = vector.load %arg28[%c0_123, %c0_124, %c0_125] : memref<1x1x64xf32, #tpu.memory_space<vmem>>, vector<1x1x64xf32>
    %191 = vector.shape_cast %190 : vector<1x1x64xf32> to vector<1x64xf32>
    %c0_126 = arith.constant 0 : index
    %c0_127 = arith.constant 0 : index
    %c0_128 = arith.constant 0 : index
    %192 = vector.load %arg29[%c0_126, %c0_127, %c0_128] : memref<1x64x32xbf16, #tpu.memory_space<vmem>>, vector<1x64x32xbf16>
    %193 = vector.shape_cast %192 : vector<1x64x32xbf16> to vector<64x32xbf16>
    %c0_129 = arith.constant 0 : index
    %c0_130 = arith.constant 0 : index
    %c0_131 = arith.constant 0 : index
    %194 = vector.load %arg30[%c0_129, %c0_130, %c0_131] : memref<1x1x32xf32, #tpu.memory_space<vmem>>, vector<1x1x32xf32>
    %195 = vector.shape_cast %194 : vector<1x1x32xf32> to vector<1x32xf32>
    %196 = arith.truncf %187 : vector<8x32xf32> to vector<8x32xbf16>
    %cst_132 = arith.constant dense<0.000000e+00> : vector<8x64xf32>
    %197 = tpu.matmul %196, %189, %cst_132 {dimension_numbers = #tpu.dot_dimension_numbers<[1], [0], [0], [1], [0, 0, 1, 1], [], []>} : vector<8x32xbf16>, vector<32x64xbf16>, vector<8x64xf32> -> vector<8x64xf32>
    %198 = vector.broadcast %191 : vector<1x64xf32> to vector<8x64xf32>
    %199 = arith.addf %197, %198 : vector<8x64xf32>
    %cst_133 = arith.constant 0.000000e+00 : f32
    %200 = vector.broadcast %cst_133 : f32 to vector<8x64xf32>
    %201 = arith.maximumf %199, %200 : vector<8x64xf32>
    %202 = arith.truncf %201 : vector<8x64xf32> to vector<8x64xbf16>
    %cst_134 = arith.constant dense<0.000000e+00> : vector<8x32xf32>
    %203 = tpu.matmul %202, %193, %cst_134 {dimension_numbers = #tpu.dot_dimension_numbers<[1], [0], [0], [1], [0, 0, 1, 1], [], []>} : vector<8x64xbf16>, vector<64x32xbf16>, vector<8x32xf32> -> vector<8x32xf32>
    %204 = vector.broadcast %195 : vector<1x32xf32> to vector<8x32xf32>
    %205 = arith.addf %203, %204 : vector<8x32xf32>
    %206 = arith.addf %163, %205 : vector<8x32xf32>
    %c0_135 = arith.constant 0 : index
    %c0_136 = arith.constant 0 : index
    %207 = vector.load %arg36[%c0_135, %c0_136] : memref<8x32xf32, #tpu.memory_space<vmem>>, vector<8x32xf32>
    tpu.vector_store %arg36[%c0_135, %c0_136], %206 {strides = array<i32>} : memref<8x32xf32, #tpu.memory_space<vmem>>, vector<8x32xf32>,
    %c1_i32 = arith.constant 1 : i32
    %208 = arith.cmpi eq, %arg1, %c1_i32 : i32
    %209 = arith.extui %208 : i1 to i32
    %c0_i32_137 = arith.constant 0 : i32
    %210 = arith.cmpi ne, %209, %c0_i32_137 : i32
    scf.if %210 {
      %c0_138 = arith.constant 0 : index
      %c0_139 = arith.constant 0 : index
      %211 = vector.load %arg31[%c0_138, %c0_139] : memref<1x32xf32, #tpu.memory_space<vmem>>, vector<1x32xf32>
      %c0_140 = arith.constant 0 : index
      %c0_141 = arith.constant 0 : index
      %212 = vector.load %arg32[%c0_140, %c0_141] : memref<1x32xf32, #tpu.memory_space<vmem>>, vector<1x32xf32>
      %cst_142 = arith.constant dense<0.000000e+00> : vector<8xf32>
      %213 = vector.multi_reduction <add>, %206, %cst_142 [1] : vector<8x32xf32> to vector<8xf32>
      %214 = vector.shape_cast %213 : vector<8xf32> to vector<8x1xf32>
      %cst_143 = arith.constant 3.200000e+01 : f32
      %215 = vector.broadcast %cst_143 : f32 to vector<8x1xf32>
      %216 = arith.divf %214, %215 : vector<8x1xf32>
      %217 = vector.broadcast %216 : vector<8x1xf32> to vector<8x32xf32>
      %218 = arith.subf %206, %217 : vector<8x32xf32>
      %219 = arith.mulf %218, %218 : vector<8x32xf32>
      %cst_144 = arith.constant dense<0.000000e+00> : vector<8xf32>
      %220 = vector.multi_reduction <add>, %219, %cst_144 [1] : vector<8x32xf32> to vector<8xf32>
      %221 = vector.shape_cast %220 : vector<8xf32> to vector<8x1xf32>
      %cst_145 = arith.constant 3.100000e+01 : f32
      %222 = vector.broadcast %cst_145 : f32 to vector<8x1xf32>
      %223 = arith.divf %221, %222 : vector<8x1xf32>
      %224 = vector.broadcast %211 : vector<1x32xf32> to vector<8x32xf32>
      %225 = arith.mulf %224, %218 : vector<8x32xf32>
      %226 = math.sqrt %223 : vector<8x1xf32>
      %cst_146 = arith.constant 9.99999997E-7 : f32
      %227 = vector.broadcast %cst_146 : f32 to vector<8x1xf32>
      %228 = arith.addf %226, %227 : vector<8x1xf32>
      %229 = vector.broadcast %228 : vector<8x1xf32> to vector<8x32xf32>
      %230 = arith.divf %225, %229 : vector<8x32xf32>
      %231 = vector.broadcast %212 : vector<1x32xf32> to vector<8x32xf32>
      %232 = arith.addf %230, %231 : vector<8x32xf32>
      %233 = arith.truncf %232 : vector<8x32xf32> to vector<8x32xbf16>
      %c0_147 = arith.constant 0 : index
      %c0_148 = arith.constant 0 : index
      %234 = vector.load %arg33[%c0_147, %c0_148] : memref<32x128xbf16, #tpu.memory_space<vmem>>, vector<32x128xbf16>
      %cst_149 = arith.constant dense<0.000000e+00> : vector<8x128xf32>
      %235 = tpu.matmul %233, %234, %cst_149 {dimension_numbers = #tpu.dot_dimension_numbers<[1], [0], [0], [1], [0, 0, 1, 1], [], []>} : vector<8x32xbf16>, vector<32x128xbf16>, vector<8x128xf32> -> vector<8x128xf32>
      %c0_150 = arith.constant 0 : index
      %c0_151 = arith.constant 0 : index
      %236 = vector.load %arg34[%c0_150, %c0_151] : memref<1x128xf32, #tpu.memory_space<vmem>>, vector<1x128xf32>
      %237 = vector.broadcast %236 : vector<1x128xf32> to vector<8x128xf32>
      %238 = arith.addf %235, %237 : vector<8x128xf32>
      %c0_152 = arith.constant 0 : index
      %c0_153 = arith.constant 0 : index
      %c0_154 = arith.constant 0 : index
      %239 = vector.load %arg35[%c0_152, %c0_153, %c0_154] : memref<1x8x128xf32, #tpu.memory_space<vmem>>, vector<1x8x128xf32>
      %240 = vector.shape_cast %239 : vector<1x8x128xf32> to vector<8x128xf32>
      %241 = vector.shape_cast %238 : vector<8x128xf32> to vector<1x8x128xf32>
      tpu.vector_store %arg35[%c0_152, %c0_153, %c0_154], %241 {strides = array<i32>} : memref<1x8x128xf32, #tpu.memory_space<vmem>>, vector<1x8x128xf32>,
    } else {
    }
    return
  }
  func.func @transform_0(%arg0: i32, %arg1: i32) -> (i32, i32, i32) {
    %c0_i32 = arith.constant 0 : i32
    %c0_i32_0 = arith.constant 0 : i32
    %c0_i32_1 = arith.constant 0 : i32
    return %arg0, %c0_i32, %c0_i32_0 : i32, i32, i32
  }
  func.func @transform_1(%arg0: i32, %arg1: i32) -> (i32, i32, i32) {
    %c0_i32 = arith.constant 0 : i32
    %c0_i32_0 = arith.constant 0 : i32
    %c0_i32_1 = arith.constant 0 : i32
    return %arg0, %c0_i32, %c0_i32_0 : i32, i32, i32
  }
  func.func @transform_2(%arg0: i32, %arg1: i32) -> (i32, i32, i32) {
    %c0_i32 = arith.constant 0 : i32
    %c0_i32_0 = arith.constant 0 : i32
    %c0_i32_1 = arith.constant 0 : i32
    return %arg0, %c0_i32, %c0_i32_0 : i32, i32, i32
  }
  func.func @transform_3(%arg0: i32, %arg1: i32) -> (i32, i32, i32) {
    %c0_i32 = arith.constant 0 : i32
    %c0_i32_0 = arith.constant 0 : i32
    %c0_i32_1 = arith.constant 0 : i32
    return %arg1, %c0_i32, %c0_i32_0 : i32, i32, i32
  }
  func.func @transform_4(%arg0: i32, %arg1: i32) -> (i32, i32, i32) {
    %c0_i32 = arith.constant 0 : i32
    %c0_i32_0 = arith.constant 0 : i32
    %c0_i32_1 = arith.constant 0 : i32
    return %arg1, %c0_i32, %c0_i32_0 : i32, i32, i32
  }
  func.func @transform_5(%arg0: i32, %arg1: i32) -> (i32, i32, i32, i32) {
    %c0_i32 = arith.constant 0 : i32
    %c0_i32_0 = arith.constant 0 : i32
    %c0_i32_1 = arith.constant 0 : i32
    %c0_i32_2 = arith.constant 0 : i32
    return %arg1, %c0_i32, %c0_i32_0, %c0_i32_1 : i32, i32, i32, i32
  }
  func.func @transform_6(%arg0: i32, %arg1: i32) -> (i32, i32, i32, i32) {
    %c0_i32 = arith.constant 0 : i32
    %c0_i32_0 = arith.constant 0 : i32
    %c0_i32_1 = arith.constant 0 : i32
    %c0_i32_2 = arith.constant 0 : i32
    return %arg1, %c0_i32, %c0_i32_0, %c0_i32_1 : i32, i32, i32, i32
  }
  func.func @transform_7(%arg0: i32, %arg1: i32) -> (i32, i32, i32, i32) {
    %c0_i32 = arith.constant 0 : i32
    %c0_i32_0 = arith.constant 0 : i32
    %c0_i32_1 = arith.constant 0 : i32
    %c0_i32_2 = arith.constant 0 : i32
    return %arg1, %c0_i32, %c0_i32_0, %c0_i32_1 : i32, i32, i32, i32
  }
  func.func @transform_8(%arg0: i32, %arg1: i32) -> (i32, i32, i32, i32) {
    %c0_i32 = arith.constant 0 : i32
    %c0_i32_0 = arith.constant 0 : i32
    %c0_i32_1 = arith.constant 0 : i32
    %c0_i32_2 = arith.constant 0 : i32
    return %arg1, %c0_i32, %c0_i32_0, %c0_i32_1 : i32, i32, i32, i32
  }
  func.func @transform_9(%arg0: i32, %arg1: i32) -> (i32, i32, i32, i32) {
    %c0_i32 = arith.constant 0 : i32
    %c0_i32_0 = arith.constant 0 : i32
    %c0_i32_1 = arith.constant 0 : i32
    %c0_i32_2 = arith.constant 0 : i32
    return %arg1, %c0_i32, %c0_i32_0, %c0_i32_1 : i32, i32, i32, i32
  }
  func.func @transform_10(%arg0: i32, %arg1: i32) -> (i32, i32, i32, i32) {
    %c0_i32 = arith.constant 0 : i32
    %c0_i32_0 = arith.constant 0 : i32
    %c0_i32_1 = arith.constant 0 : i32
    %c0_i32_2 = arith.constant 0 : i32
    return %arg1, %c0_i32, %c0_i32_0, %c0_i32_1 : i32, i32, i32, i32
  }
  func.func @transform_11(%arg0: i32, %arg1: i32) -> (i32, i32, i32, i32) {
    %c0_i32 = arith.constant 0 : i32
    %c0_i32_0 = arith.constant 0 : i32
    %c0_i32_1 = arith.constant 0 : i32
    %c0_i32_2 = arith.constant 0 : i32
    return %arg1, %c0_i32, %c0_i32_0, %c0_i32_1 : i32, i32, i32, i32
  }
  func.func @transform_12(%arg0: i32, %arg1: i32) -> (i32, i32, i32) {
    %c0_i32 = arith.constant 0 : i32
    %c0_i32_0 = arith.constant 0 : i32
    %c0_i32_1 = arith.constant 0 : i32
    return %arg1, %c0_i32, %c0_i32_0 : i32, i32, i32
  }
  func.func @transform_13(%arg0: i32, %arg1: i32) -> (i32, i32, i32) {
    %c0_i32 = arith.constant 0 : i32
    %c0_i32_0 = arith.constant 0 : i32
    %c0_i32_1 = arith.constant 0 : i32
    return %arg1, %c0_i32, %c0_i32_0 : i32, i32, i32
  }
  func.func @transform_14(%arg0: i32, %arg1: i32) -> (i32, i32, i32) {
    %c0_i32 = arith.constant 0 : i32
    %c0_i32_0 = arith.constant 0 : i32
    %c0_i32_1 = arith.constant 0 : i32
    return %arg1, %c0_i32, %c0_i32_0 : i32, i32, i32
  }
  func.func @transform_15(%arg0: i32, %arg1: i32) -> (i32, i32, i32, i32) {
    %c0_i32 = arith.constant 0 : i32
    %c0_i32_0 = arith.constant 0 : i32
    %c0_i32_1 = arith.constant 0 : i32
    %c0_i32_2 = arith.constant 0 : i32
    return %arg1, %c0_i32, %c0_i32_0, %c0_i32_1 : i32, i32, i32, i32
  }
  func.func @transform_16(%arg0: i32, %arg1: i32) -> (i32, i32, i32, i32) {
    %c0_i32 = arith.constant 0 : i32
    %c0_i32_0 = arith.constant 0 : i32
    %c0_i32_1 = arith.constant 0 : i32
    %c0_i32_2 = arith.constant 0 : i32
    return %arg1, %c0_i32, %c0_i32_0, %c0_i32_1 : i32, i32, i32, i32
  }
  func.func @transform_17(%arg0: i32, %arg1: i32) -> (i32, i32, i32, i32) {
    %c0_i32 = arith.constant 0 : i32
    %c0_i32_0 = arith.constant 0 : i32
    %c0_i32_1 = arith.constant 0 : i32
    %c0_i32_2 = arith.constant 0 : i32
    return %arg1, %c0_i32, %c0_i32_0, %c0_i32_1 : i32, i32, i32, i32
  }
  func.func @transform_18(%arg0: i32, %arg1: i32) -> (i32, i32, i32, i32) {
    %c0_i32 = arith.constant 0 : i32
    %c0_i32_0 = arith.constant 0 : i32
    %c0_i32_1 = arith.constant 0 : i32
    %c0_i32_2 = arith.constant 0 : i32
    return %arg1, %c0_i32, %c0_i32_0, %c0_i32_1 : i32, i32, i32, i32
  }
  func.func @transform_19(%arg0: i32, %arg1: i32) -> (i32, i32, i32, i32) {
    %c0_i32 = arith.constant 0 : i32
    %c0_i32_0 = arith.constant 0 : i32
    %c0_i32_1 = arith.constant 0 : i32
    %c0_i32_2 = arith.constant 0 : i32
    return %arg1, %c0_i32, %c0_i32_0, %c0_i32_1 : i32, i32, i32, i32
  }
  func.func @transform_20(%arg0: i32, %arg1: i32) -> (i32, i32, i32, i32) {
    %c0_i32 = arith.constant 0 : i32
    %c0_i32_0 = arith.constant 0 : i32
    %c0_i32_1 = arith.constant 0 : i32
    %c0_i32_2 = arith.constant 0 : i32
    return %arg1, %c0_i32, %c0_i32_0, %c0_i32_1 : i32, i32, i32, i32
  }
  func.func @transform_21(%arg0: i32, %arg1: i32) -> (i32, i32, i32, i32) {
    %c0_i32 = arith.constant 0 : i32
    %c0_i32_0 = arith.constant 0 : i32
    %c0_i32_1 = arith.constant 0 : i32
    %c0_i32_2 = arith.constant 0 : i32
    return %arg1, %c0_i32, %c0_i32_0, %c0_i32_1 : i32, i32, i32, i32
  }
  func.func @transform_22(%arg0: i32, %arg1: i32) -> (i32, i32, i32) {
    %c0_i32 = arith.constant 0 : i32
    %c0_i32_0 = arith.constant 0 : i32
    %c0_i32_1 = arith.constant 0 : i32
    return %arg1, %c0_i32, %c0_i32_0 : i32, i32, i32
  }
  func.func @transform_23(%arg0: i32, %arg1: i32) -> (i32, i32, i32) {
    %c0_i32 = arith.constant 0 : i32
    %c0_i32_0 = arith.constant 0 : i32
    %c0_i32_1 = arith.constant 0 : i32
    return %arg1, %c0_i32, %c0_i32_0 : i32, i32, i32
  }
  func.func @transform_24(%arg0: i32, %arg1: i32) -> (i32, i32, i32) {
    %c0_i32 = arith.constant 0 : i32
    %c0_i32_0 = arith.constant 0 : i32
    %c0_i32_1 = arith.constant 0 : i32
    return %arg1, %c0_i32, %c0_i32_0 : i32, i32, i32
  }
  func.func @transform_25(%arg0: i32, %arg1: i32) -> (i32, i32, i32) {
    %c0_i32 = arith.constant 0 : i32
    %c0_i32_0 = arith.constant 0 : i32
    %c0_i32_1 = arith.constant 0 : i32
    return %arg1, %c0_i32, %c0_i32_0 : i32, i32, i32
  }
  func.func @transform_26(%arg0: i32, %arg1: i32) -> (i32, i32, i32) {
    %c0_i32 = arith.constant 0 : i32
    %c0_i32_0 = arith.constant 0 : i32
    %c0_i32_1 = arith.constant 0 : i32
    return %arg1, %c0_i32, %c0_i32_0 : i32, i32, i32
  }
  func.func @transform_27(%arg0: i32, %arg1: i32) -> (i32, i32, i32) {
    %c0_i32 = arith.constant 0 : i32
    %c0_i32_0 = arith.constant 0 : i32
    %c0_i32_1 = arith.constant 0 : i32
    return %arg1, %c0_i32, %c0_i32_0 : i32, i32, i32
  }
  func.func @transform_28(%arg0: i32, %arg1: i32) -> (i32, i32, i32) {
    %c0_i32 = arith.constant 0 : i32
    %c0_i32_0 = arith.constant 0 : i32
    %c0_i32_1 = arith.constant 0 : i32
    return %arg1, %c0_i32, %c0_i32_0 : i32, i32, i32
  }
  func.func @transform_29(%arg0: i32, %arg1: i32) -> (i32, i32) {
    %c0_i32 = arith.constant 0 : i32
    %c0_i32_0 = arith.constant 0 : i32
    %c0_i32_1 = arith.constant 0 : i32
    return %c0_i32, %c0_i32_0 : i32, i32
  }
  func.func @transform_30(%arg0: i32, %arg1: i32) -> (i32, i32) {
    %c0_i32 = arith.constant 0 : i32
    %c0_i32_0 = arith.constant 0 : i32
    %c0_i32_1 = arith.constant 0 : i32
    return %c0_i32, %c0_i32_0 : i32, i32
  }
  func.func @transform_31(%arg0: i32, %arg1: i32) -> (i32, i32) {
    %c0_i32 = arith.constant 0 : i32
    %c0_i32_0 = arith.constant 0 : i32
    %c0_i32_1 = arith.constant 0 : i32
    return %c0_i32, %c0_i32_0 : i32, i32
  }
  func.func @transform_32(%arg0: i32, %arg1: i32) -> (i32, i32) {
    %c0_i32 = arith.constant 0 : i32
    %c0_i32_0 = arith.constant 0 : i32
    %c0_i32_1 = arith.constant 0 : i32
    return %c0_i32, %c0_i32_0 : i32, i32
  }
  func.func @transform_33(%arg0: i32, %arg1: i32) -> (i32, i32, i32) {
    %c0_i32 = arith.constant 0 : i32
    %c0_i32_0 = arith.constant 0 : i32
    %c0_i32_1 = arith.constant 0 : i32
    return %arg0, %c0_i32, %c0_i32_0 : i32, i32, i32
  }
}

</mosaic_0001>

<bundles_post_ra>
// kernel: transformer_lm_forward.1
= control target key start
LH: loop header
LB: loop body
LE: loop exit
PB: predicated region body
PF: predicated region fallthrough
CT: control target
= control target key end

     0   :  { %s6097_s6 = smov 1   ;;  %s6098_s10 = smov 2   ;;  %s6988_s0 = inlined_call_operand.smem [shape: u32[34], index: -1, kind: input, shape index: {}] }
   0x1   :  { %s6143_s5 = sld [smem:[%s6988_s0]]   ;;  %s6099_s14 = smov 3  }
   0x2   :  { %s6148_s9 = sld [smem:[%s6988_s0 + %s6097_s6]]   ;;  %s6100_s18 = smov 4  }
   0x3   :  { %s6153_s13 = sld [smem:[%s6988_s0 + %s6098_s10]]   ;;  %s6101_s22 = smov 5  }
   0x4   :  { %s6158_s17 = sld [smem:[%s6988_s0 + %s6099_s14]]   ;;  %s6102_s26 = smov 6  }
   0x5   :  { %s6163_s21 = sld [smem:[%s6988_s0 + %s6100_s18]]   ;;  %s6103_s30 = smov 7  }
   0x6   :  { %s6168_s25 = sld [smem:[%s6988_s0 + %s6101_s22]]   ;;  %s6104_s4 = smov 8  }
   0x7   :  { %7015 = sst [smem:[#allocation6_spill]] %s6143_s5  ;;  %s6105_s10 = smov 9  }
   0x8   :  { %7016 = sst [smem:[#allocation7_spill]] %s6148_s9  ;;  %s6106_s15 = smov 10  }
   0x9   :  { %7017 = sst [smem:[#allocation8_spill]] %s6153_s13  ;;  %s6107_s20 = smov 11  }
   0xa   :  { %7018 = sst [smem:[#allocation9_spill]] %s6158_s17  ;;  %s6109_s1 = smov 13  }
   0xb   :  { %7019 = sst [smem:[#allocation10_spill]] %s6163_s21  ;;  %s6110_s7 = smov 14  }
   0xc   :  { %7020 = sst [smem:[#allocation11_spill]] %s6168_s25  ;;  %s6112_s22 = smov 16  }
   0xd   :  { %s6173_s29 = sld [smem:[%s6988_s0 + %s6102_s26]]   ;;  %s6108_s26 = smov 12  }
   0xe   :  { %s6178_s3 = sld [smem:[%s6988_s0 + %s6103_s30]]   ;;  %s6113_s28 = smov 17  }
   0xf   :  { %s6183_s8 = sld [smem:[%s6988_s0 + %s6104_s4]]  }
  0x10   :  { %s6188_s14 = sld [smem:[%s6988_s0 + %s6105_s10]]  }
  0x11   :  { %s6193_s19 = sld [smem:[%s6988_s0 + %s6106_s15]]   ;;  %s6111_s15 = smov 15  }
  0x12   :  { %s6198_s24 = sld [smem:[%s6988_s0 + %s6107_s20]]  }
  0x13   :  { %7021 = sst [smem:[#allocation12_spill]] %s6173_s29 }
  0x14   :  { %7022 = sst [smem:[#allocation13_spill]] %s6178_s3 }
  0x15   :  { %7023 = sst [smem:[#allocation14_spill]] %s6183_s8 }
  0x16   :  { %7024 = sst [smem:[#allocation15_spill]] %s6188_s14 }
  0x17   :  { %7025 = sst [smem:[#allocation16_spill]] %s6193_s19 }
  0x18   :  { %7026 = sst [smem:[#allocation17_spill]] %s6198_s24 }
  0x19   :  { %s6203_s30 = sld [smem:[%s6988_s0 + %s6108_s26]]  }
  0x1a   :  { %s6208_s6 = sld [smem:[%s6988_s0 + %s6109_s1]]  }
  0x1b   :  { %s6213_s12 = sld [smem:[%s6988_s0 + %s6110_s7]]   ;;  %s6114_s7 = smov 18  }
  0x1c   :  { %s6218_s20 = sld [smem:[%s6988_s0 + %s6111_s15]]   ;;  %s6115_s15 = smov 19  }
  0x1d   :  { %s6223_s27 = sld [smem:[%s6988_s0 + %s6112_s22]]   ;;  %s6116_s22 = smov 20  }
  0x1e   :  { %s6228_s4 = sld [smem:[%s6988_s0 + %s6113_s28]]   ;;  %s6117_s28 = smov 21  }
  0x1f   :  { %7027 = sst [smem:[#allocation18_spill]] %s6203_s30 }
  0x20   :  { %7028 = sst [smem:[#allocation19_spill]] %s6208_s6 }
  0x21   :  { %7029 = sst [smem:[#allocation20_spill]] %s6213_s12 }
  0x22   :  { %7030 = sst [smem:[#allocation21_spill]] %s6218_s20 }
  0x23   :  { %7031 = sst [smem:[#allocation22_spill]] %s6223_s27 }
  0x24   :  { %7032 = sst [smem:[#allocation23_spill]] %s6228_s4 }
  0x25   :  { %s6233_s12 = sld [smem:[%s6988_s0 + %s6114_s7]]   ;;  %s6118_s7 = smov 22  }
  0x26   :  { %s6238_s20 = sld [smem:[%s6988_s0 + %s6115_s15]]   ;;  %s6119_s15 = smov 23  }
  0x27   :  { %s6243_s27 = sld [smem:[%s6988_s0 + %s6116_s22]]   ;;  %s6120_s22 = smov 24  }
  0x28   :  { %s6248_s4 = sld [smem:[%s6988_s0 + %s6117_s28]]   ;;  %s6121_s28 = smov 25  }
  0x2b   :  { %7033 = sst [smem:[#allocation24_spill]] %s6233_s12 }
  0x2c   :  { %7034 = sst [smem:[#allocation25_spill]] %s6238_s20 }
  0x2d   :  { %7035 = sst [smem:[#allocation26_spill]] %s6243_s27 }
  0x2e   :  { %7036 = sst [smem:[#allocation27_spill]] %s6248_s4 }
  0x2f   :  { %s6253_s12 = sld [smem:[%s6988_s0 + %s6118_s7]]   ;;  %s6122_s7 = smov 26  }
  0x30   :  { %s6258_s20 = sld [smem:[%s6988_s0 + %s6119_s15]]   ;;  %s6123_s15 = smov 27  }
  0x31   :  { %s6263_s27 = sld [smem:[%s6988_s0 + %s6120_s22]]   ;;  %s6124_s22 = smov 28  }
  0x32   :  { %s6268_s4 = sld [smem:[%s6988_s0 + %s6121_s28]]   ;;  %s6125_s28 = smov 29  }
  0x35   :  { %7037 = sst [smem:[#allocation28_spill]] %s6253_s12 }
  0x36   :  { %7038 = sst [smem:[#allocation29_spill]] %s6258_s20 }
  0x37   :  { %7039 = sst [smem:[#allocation30_spill]] %s6263_s27 }
  0x38   :  { %7040 = sst [smem:[#allocation31_spill]] %s6268_s4 }
  0x39   :  { %s6273_s12 = sld [smem:[%s6988_s0 + %s6122_s7]]   ;;  %s6126_s7 = smov 30  }
  0x3a   :  { %s6278_s20 = sld [smem:[%s6988_s0 + %s6123_s15]]   ;;  %s6127_s15 = smov 31  }
  0x3b   :  { %s6283_s27 = sld [smem:[%s6988_s0 + %s6124_s22]]   ;;  %s6128_s22 = smov 32  }
  0x3c   :  { %s6288_s4 = sld [smem:[%s6988_s0 + %s6125_s28]]   ;;  %s6129_s28 = smov 33  }
  0x3f   :  { %7041 = sst [smem:[#allocation32_spill]] %s6273_s12 }
  0x40   :  { %7042 = sst [smem:[#allocation33_spill]] %s6278_s20 }
  0x41   :  { %7043 = sst [smem:[#allocation34_spill]] %s6283_s27 }
  0x42   :  { %7044 = sst [smem:[#allocation35_spill]] %s6288_s4 }
  0x43   :  { %s6293_s12 = sld [smem:[%s6988_s0 + %s6126_s7]]  }
  0x44   :  { %s6298_s20 = sld [smem:[%s6988_s0 + %s6127_s15]]  }
  0x45   :  { %s6303_s27 = sld [smem:[%s6988_s0 + %s6128_s22]]  }
  0x46   :  { %s6308_s4 = sld [smem:[%s6988_s0 + %s6129_s28]]  }
  0x49   :  { %7045 = sst [smem:[#allocation36_spill]] %s6293_s12 }
  0x4a   :  { %7046 = sst [smem:[#allocation37_spill]] %s6298_s20 }
  0x4b   :  { %7047 = sst [smem:[#allocation38_spill]] %s6303_s27 }
  0x4c   :  { %7048 = sst [smem:[#allocation39_spill]] %s6308_s4 }
  0x4d   :  { %72 = vsyncpa [#allocation4], 0 }
  0x4e   :  { %74 = vsyncpa [#allocation4 + $0x1], 0  ;;  %s6310_s7 = smov 0   ;;  %s6312_s10 = smov 0  }
  0x4f   :  { %s6314_s11 = smov 0   ;;  %s6316_s15 = smov 0  }
  0x50   :  { %s6318_s16 = smov 0   ;;  %s6320_s18 = smov 0  }
  0x51   :  { %s6322_s22 = smov 0   ;;  %s6324_s23 = smov 0  }
  0x52 LB: > { %7049 = sst [smem:[#allocation40_spill]] %s6067_s7  ;;  %s5099_s0 = sadd.s32 4294967295, %s6095_s23   ;;  %s6095_s23 = sphi %s6324_s23, %s80_s23   ;;  %s6091_s22 = sphi %s6322_s22, %s7158_s22   ;;  %s6087_s18 = sphi %s6320_s18, %s7157_s18   ;;  %s6083_s16 = sphi %s6318_s16, %s7156_s16   ;;  %s6079_s15 = sphi %s6316_s15, %s7155_s15   ;;  %s6075_s11 = sphi %s6314_s11, %s7154_s11   ;;  %s6071_s10 = sphi %s6312_s10, %s7153_s10   ;;  %s6067_s7 = sphi %s6310_s7, %s7152_s7  }
  0x53   : > { %7050 = sst [smem:[#allocation41_spill]] %s6071_s10  ;;  %s5100_s26 = sadd.s32 4294967294, %s6095_s23  }
  0x54   : > { %7051 = sst [smem:[#allocation42_spill]] %s6075_s11  ;;  %s89_s28 = sadd.s32 1, %s6087_s18 }
  0x55   : > { %7052 = sst [smem:[#allocation43_spill]] %s6079_s15  ;;  %p90_p0 = scmp.ge.s32.totalorder %s89_s28, 2 }
  0x56   : > { %7053 = sst [smem:[#allocation44_spill]] %s6083_s16  ;;  %s92_s1 = sadd.s32 1, %s6091_s22 }
  0x57   : > { %7054 = sst [smem:[#allocation45_spill]] %s6087_s18  ;;  %p947_p1 = scmp.ne.s32.totalorder %s6075_s11, %s6071_s10 }
  0x58   : > { %7055 = sst [smem:[#allocation46_spill]] %s6091_s22  ;;  %p948_p2 = scmp.eq.s32.totalorder %s5099_s0, 3 }
  0x59   : > { %7056 = sst [smem:[#allocation47_spill]] %s6095_s23  ;;  %s7160_s28 = smov (%p90_p0, %s89_s28), 0 }
  0x5a   : > { %7057 = sst [smem:[#allocation48_spill]] %s7160_s28  ;;  %s7162_s1 = smov (!%p90_p0, %s92_s1), %s6091_s22 }
  0x5b   : > { %p6359_p3 = por %p948_p2, %p947_p1  ;;  %p953_p4 = scmp.ne.s32.totalorder %s6071_s10, %s6067_s7 }
  0x5c   : > { %p94_p5 = scmp.ge.s32.totalorder %s7162_s1, 2  ;;  %p954_p6 = scmp.eq.s32.totalorder %s5100_s26, 3 }
  0x5d   : > { %s7058_s2 = scalar_select %p6359_p3, 1, 0 }
  0x5e   : > { %p5103_p7 = scmp.ge.s32.totalorder %s6095_s23, 1  ;;  %p1186_p8 = scmp.lt.s32.totalorder %s6095_s23, 5 }
  0x5f   : > { %7059 = sst [smem:[#allocation49_spill]] %s7058_s2  ;;  %s7164_s1 = smov (%p94_p5, %s7162_s1), 0 }
  0x60   : > { %7060 = sst [smem:[#allocation50_spill]] %s7164_s1  ;;  %p6369_p9 = por %p954_p6, %p953_p4 }
  0x61   : > { %p1187_p10 = pnand %p5103_p7, %p1186_p8  ;;  %s934_s0 = ssub.s32 %s6091_s22, %s7164_s1 }
  0x62   : > { %s7061_s18 = scalar_select %p6369_p9, 1, 0 }
  0x63   : > { %s937_s28 = sadd.s32 1, %s6075_s11  ;;  %p935_p11 = scmp.eq.s32.totalorder %s934_s0, 0 }
  0x64   : > { %7062 = sst [smem:[#allocation51_spill]] %s7061_s18  ;;  %1190 = sbr.rel (%p1187_p10) target bundleno = 4582 (0x11e6), region = 152 }
  0x65   : > { %s6377_s4 = scalar_select %p935_p11, %s6075_s11, %s937_s28  }
  0x67   : > { %7063 = sst [smem:[#allocation52_spill]] %s6377_s4 }
  0x6b   : > { %s7065_s5 = sld [smem:[#allocation6_spill]]  ;;  %s7066_s13 = sld [smem:[#allocation8_spill]] }
  0x6c   : > { %s7069_s25 = sld [smem:[#allocation11_spill]]  ;;  %s7070_s29 = sld [smem:[#allocation12_spill]] }
  0x6d   : > { %s6993_s26 = sand.u32 1, %s6071_s10   ;;  %s7071_s3 = sld [smem:[#allocation13_spill]] }
  0x6e   : > { %p1380_p12 = scmp.lt.s32.totalorder %s6083_s16, 1  ;;  %s7072_s8 = sld [smem:[#allocation14_spill]] }
  0x6f   : > { %s6383_s28 = sshll.u32 %s6993_s26, 3  ;;  %s7074_s14 = sld [smem:[#allocation15_spill]] }
  0x70   : > { %7073 = sst [smem:[#allocation53_spill]] %s6383_s28  ;;  %p1391_p13 = scmp.lt.s32.totalorder %s6079_s15, 1 }
  0x71   : > { %s7075_s19 = sld [smem:[#allocation16_spill]]  ;;  %s7078_s24 = sld [smem:[#allocation17_spill]] }
  0x72   : > { %s6387_s0 = scalar_select %p1380_p12, %s6083_s16, 1 }
  0x73   : > { %s6390_s1 = scalar_select %p1391_p13, %s6079_s15, 1 }
  0x74   : > { %7076 = sst [smem:[#allocation54_spill]] %s6387_s0  ;;  %s5105_s22 = sshll.u32 %s6387_s0, 3 }
  0x75   : > { %s6396_s4 = scalar_lea.vmem %s7065_s5, %s5105_s22  ;;  %s6399_s18 = scalar_lea.vmem %s7066_s13, %s5105_s22 }
  0x76   : > { %7080 = sst [smem:[#allocation55_spill]] %s6396_s4  ;;  %s7083_s7 = sld [smem:[#allocation21_spill]] }
  0x77   : > { %7082 = sst [smem:[#allocation56_spill]] %s6399_s18  ;;  %s7084_s2 = sld [smem:[#allocation22_spill]] }
  0x78   : > { %s7085_s16 = sld [smem:[#allocation23_spill]]  ;;  %s5284_s27 = sshll.u32 %s6390_s1, 6 }
  0x79   : > { %s7086_s12 = sld [smem:[#allocation24_spill]]  ;;  %s5109_s20 = sshll.u32 %s6390_s1, 2 }
  0x7a   : > { %s7087_s15 = sld [smem:[#allocation25_spill]]  ;;  %s6408_s28 = scalar_lea.vmem %s7069_s25, %s5284_s27 }
  0x7b   : > { %7088 = sst [smem:[#allocation57_spill]] %s6408_s28  ;;  %s7089_s26 = sld [smem:[#allocation26_spill]] }
  0x7c   : > { %s6411_s0 = scalar_lea.vmem %s7070_s29, %s5109_s20  ;;  %s7091_s5 = sld [smem:[#allocation27_spill]] }
  0x7d   : > { %7090 = sst [smem:[#allocation58_spill]] %s6411_s0  ;;  %s6414_s9 = scalar_lea.vmem %s7071_s3, %s5284_s27 }
  0x7e   : > { %7092 = sst [smem:[#allocation59_spill]] %s6414_s9  ;;  %s7093_s22 = sld [smem:[#allocation28_spill]] }
  0x7f   : > { %s6417_s13 = scalar_lea.vmem %s7072_s8, %s5109_s20  ;;  %s7095_s23 = sld [smem:[#allocation29_spill]] }
  0x80   : > { %7094 = sst [smem:[#allocation60_spill]] %s6417_s13  ;;  %s6420_s10 = scalar_lea.vmem %s7074_s14, %s5284_s27 }
  0x81   : > { %7096 = sst [smem:[#allocation61_spill]] %s6420_s10  ;;  %s7097_s18 = sld [smem:[#allocation30_spill]] }
  0x82   : > { %s6423_s21 = scalar_lea.vmem %s7075_s19, %s5109_s20  ;;  %s7099_s25 = sld [smem:[#allocation31_spill]] }
  0x83   : > { %7098 = sst [smem:[#allocation62_spill]] %s6423_s21  ;;  %s5287_s17 = sshll.u32 %s6390_s1, 4 }
  0x84   : > { %s7100_s29 = sld [smem:[#allocation32_spill]]  ;;  %s6429_s3 = scalar_lea.vmem %s7078_s24, %s5287_s17 }
  0x85   : > { %7101 = sst [smem:[#allocation63_spill]] %s6429_s3  ;;  %s7102_s9 = sld [smem:[#allocation33_spill]] }
  0x86   : > { %s7103_s8 = sld [smem:[#allocation34_spill]]  ;;  %s7104_s4 = sld [smem:[#allocation53_spill]] }
  0x87   : > { %s6436_s14 = scalar_lea.vmem %s7083_s7, %s5284_s27  ;;  %s6439_s10 = scalar_lea.vmem %s7084_s2, %s5109_s20 }
  0x88   : > { %7105 = sst [smem:[#allocation64_spill]] %s6436_s14  ;;  %s6442_s19 = scalar_lea.vmem %s7085_s16, %s5284_s27 }
  0x89   : > { %7106 = sst [smem:[#allocation65_spill]] %s6439_s10  ;;  %s6445_s21 = scalar_lea.vmem %s7086_s12, %s5109_s20 }
  0x8a   : > { %s6448_s0 = scalar_lea.vmem %s7087_s15, %s5284_s27  ;;  %s6451_s30 = scalar_lea.vmem %s7089_s26, %s5109_s20 }
  0x8b   : > { %s6454_s24 = scalar_lea.vmem %s7091_s5, %s5287_s17  ;;  %s1472_s3 = scalar_lea.vmem %s7093_s22, %s6390_s1 }
  0x8c   : > { %s1475_s28 = scalar_lea.vmem %s7095_s23, %s6390_s1  ;;  %s1478_s6 = scalar_lea.vmem %s7097_s18, %s6390_s1 }
  0x8d   : > { %s6463_s11 = scalar_lea.vmem %s7099_s25, %s5287_s17  ;;  %s1486_s13 = scalar_lea.vmem %s7100_s29, %s6390_s1 }
  0x8e   : > { %s5293_s7 = sshll.u32 %s6390_s1, 5  ;;  %s1494_s2 = scalar_lea.vmem %s7103_s8, %s6390_s1 }
  0x8f   : > { %s6469_s14 = scalar_lea.vmem %s7102_s9, %s5293_s7  ;;  %s1379_s16 = scalar_lea.vmem [#allocation3], %s7104_s4 }
  0x90   : > { %s7107_s10 = sld [smem:[#allocation43_spill]] }
  0x96   : > { %p5133_p0 = scmp.ne.s32.totalorder %s7107_s10, 0 }
  0x97   : > { %s7108_s12 = sld [smem:[#allocation55_spill]] (!%p5133_p0)  ;;  %vm1501_vm0 = vcmask (!%p5133_p0), 261120  }
  0x98   : > { %1499 = sbr.rel (%p5133_p0) target bundleno = 159 (0x9f), region = 156 }
  0x9d   : > { %v1500_v0 = vld [vmem:[%s7108_s12] sm:$0xff] (!%p5133_p0) }
  0x9e   : > { %1502 = vst.msk [vmem:[#allocation2] sm:$0xff] (!%p5133_p0), %vm1501_vm0, %v1500_v0 }
  0x9f PF: > { %s7109_s5 = sld [smem:[#allocation57_spill]]  ;;  %vm1508_vm1 = vcmask 261120   ;;  %v6130_v10 = vmov 0.0   ;;  %vm6131_vm2 = vmmov 0   ;;  %s7111_s17 = sld [smem:[#allocation10_spill]]  ;;  %vm2318_vm5 = vcmask 64512  }
  0xa0   : > { %5425 = vmatprep.subr.bf16.mxu0 %v6130_v10  ;;  %5433 = vmatprep.subr.bf16.mxu1 %v6130_v10  ;;  %s7110_s9 = sld [smem:[#allocation9_spill]]  ;;  %s7114_s8 = sld [smem:[#allocation59_spill]]  ;;  %vm2558_vm6 = vcmask 1043456   ;;  %vm4525_vm11 = vcmask 523264  }
  0xa1   : > { %5429 = vmatprep.mubr.msk.bf16.mxu0 %vm6131_vm2, %v6130_v10  ;;  %5437 = vmatprep.mubr.msk.bf16.mxu1 %vm6131_vm2, %v6130_v10  ;;  %s7115_s20 = sld [smem:[#allocation61_spill]]  ;;  %s7116_s27 = sld [smem:[#allocation60_spill]] }
  0xa2   : > { %s7117_s4 = sld [smem:[#allocation58_spill]]  ;;  %s7118_s10 = sld [smem:[#allocation62_spill]] }
  0xa3   : > { %s7119_s15 = sld [smem:[#allocation56_spill]]  ;;  %s7120_s18 = sld [smem:[#allocation63_spill]] }
  0xa4   : > { %s7121_s23 = sld [smem:[#allocation18_spill]]  ;;  %s7123_s22 = sld [smem:[#allocation64_spill]] }
  0xa5   : > { %v6476_v1 = vld [vmem:[#allocation2] sm:$0xff]  ;;  %v5898_v9 = vld [vmem:[%s7109_s5 + $0x10] sm:$0xff]   ;;  %v5899_v11 = vld [vmem:[%s7109_s5 + $0x8] sm:$0xff]   ;;  %s7113_s29 = scalar_lea.vmem %s7111_s17, %s6390_s1  ;;  %s7124_s7 = sld [smem:[#allocation19_spill]] }
  0xa6   : > { %v1509_v2 = vsel %vm1508_vm1, %v6476_v1, 0.0  ;;  %v5897_v8 = vld [vmem:[%s7109_s5] sm:$0xff]   ;;  %5434 = vmatpush3.bf16.msra.mxu1 %v5898_v9  ;;  %v5900_v12 = vld [vmem:[%s7109_s5 + $0x18] sm:$0xff]   ;;  %s7112_s25 = scalar_lea.vmem %s7110_s9, %s6390_s1  ;;  %v5902_v28 = vld [vmem:[%s7109_s5 + $0x30] sm:$0xff]   ;;  %s7125_s12 = sld [smem:[#allocation20_spill]] }
  0xa7   : > { %1510 = vadd.xlane.f32.xlu0 %v1509_v2  ;;  %5426 = vmatpush3.bf16.msra.mxu0 %v5897_v8  ;;  %v5134_v21 = vld [vmem:[%s7112_s25] ss:$0 sm:$0xff]  ;;  %v5903_v30 = vld [vmem:[%s7109_s5 + $0x28] sm:$0xff]   ;;  %v5904_v31 = vld [vmem:[%s7109_s5 + $0x38] sm:$0xff]  }
  0xa8   : > { %5427 = vmatprep.subr.bf16.mxu0 %v6130_v10  ;;  %5435 = vmatprep.subr.bf16.mxu1 %v6130_v10  ;;  %v5135_v24 = vld [vmem:[%s7113_s29] ss:$0 sm:$0xff]  ;;  %v5906_v33 = vld [vmem:[%s7114_s8 + $0x10] sm:$0xff]   ;;  %v5907_v34 = vld [vmem:[%s7114_s8 + $0x8] sm:$0xff]  }
  0xa9   : > { %v5901_v27 = vld [vmem:[%s7109_s5 + $0x20] sm:$0xff]   ;;  %v5908_v35 = vld [vmem:[%s7114_s8 + $0x18] sm:$0xff]   ;;  %v5910_v37 = vld [vmem:[%s7114_s8 + $0x30] sm:$0xff]  }
  0xaa   : > { %5436 = vmatpush3.bf16.msra.mxu1 %v5900_v12  ;;  %v5905_v32 = vld [vmem:[%s7114_s8] sm:$0xff]   ;;  %v5911_v38 = vld [vmem:[%s7114_s8 + $0x28] sm:$0xff]   ;;  %v5912_v39 = vld [vmem:[%s7114_s8 + $0x38] sm:$0xff]   ;;  %s7122_s26 = scalar_lea.vmem %s7121_s23, %s6390_s1 }
  0xab   : > { %5428 = vmatpush3.bf16.msra.mxu0 %v5899_v11  ;;  %5449 = vmatprep.subr.bf16.mxu1 %v6130_v10  ;;  %v5909_v36 = vld [vmem:[%s7114_s8 + $0x20] sm:$0xff]   ;;  %v5914_v41 = vld [vmem:[%s7115_s20 + $0x10] sm:$0xff]   ;;  %v5915_v42 = vld [vmem:[%s7115_s20 + $0x8] sm:$0xff]   ;;  %s7126_s5 = scalar_lea.vmem %s7124_s7, %s6390_s1 }
  0xac   : > { %5441 = vmatprep.subr.bf16.mxu0 %v6130_v10  ;;  %v5913_v40 = vld [vmem:[%s7115_s20] sm:$0xff]   ;;  %v5916_v43 = vld [vmem:[%s7115_s20 + $0x18] sm:$0xff]   ;;  %v5918_v45 = vld [vmem:[%s7115_s20 + $0x30] sm:$0xff]   ;;  %s7127_s9 = scalar_lea.vmem %s7125_s12, %s6390_s1 }
  0xad   : > { %v5917_v44 = vld [vmem:[%s7115_s20 + $0x20] sm:$0xff]   ;;  %v5919_v46 = vld [vmem:[%s7115_s20 + $0x28] sm:$0xff]   ;;  %v5920_v47 = vld [vmem:[%s7115_s20 + $0x38] sm:$0xff]  }
  0xae   : > { %v5152_v0 = vld [vmem:[%s7116_s27] ss:$0 sm:$0xff]  ;;  %v5153_v2 = vld [vmem:[%s7116_s27 + $0x1] ss:$0 sm:$0xff] }
 0x134   : > { %v1511_v3 = vpop.xlane.xlu0 %1510 }
 0x135   : > { %v1513_v4 = vmul.f32 0.03125, %v1511_v3 }
 0x137   : > { %v1514_v5 = vsub.f32 %v6476_v1, %v1513_v4 }
 0x139   : > { %v1515_v6 = vmul.f32 %v1514_v5, %v1514_v5  ;;  %v1527_v22 = vmul.f32 %v5134_v21, %v1514_v5  ;;  %v5155_v21 = vld [vmem:[%s7116_s27 + $0x3] ss:$0 sm:$0xff] }
 0x13b   : > { %v1516_v7 = vsel %vm1508_vm1, %v1515_v6, 0.0 }
 0x13c   : > { %1517 = vadd.xlane.f32.xlu0 %v1516_v7 }
 0x1c9   : > { %v1518_v13 = vpop.xlane.xlu0 %1517 }
 0x1ca   : > { %v1520_v14 = vmul.f32 0.032258064, %v1518_v13 }
 0x1cc   : > { %5951 = vrsqrt.f32 %v1520_v14  ;;  %vm1530_vm3 = vcmp.eq.f32.partialorder %v1520_v14, inf  ;;  %v1533_v17 = vand.u32 2147483648, %v1520_v14  ;;  %vm1532_vm4 = vcmp.eq.f32.partialorder %v1520_v14, 0.0 }
 0x1d6   : > { %v5952_v15 = vpop.eup %5951 }
 0x1d7   : > { %v1529_v16 = vmul.f32 %v5952_v15, %v1520_v14 }
 0x1d9   : > { %v1531_v18 = vsel %vm1530_vm3, %v1520_v14, %v1529_v16  ;;  %v5136_v16 = vld [vmem:[%s7117_s4] ss:$0 sm:$0xff] }
 0x1da   : > { %v1534_v19 = vsel %vm1532_vm4, %v1533_v17, %v1531_v18  ;;  %v5137_v17 = vld [vmem:[%s7117_s4 + $0x1] ss:$0 sm:$0xff] }
 0x1db   : > { %v1535_v20 = vadd.f32 1e-06, %v1534_v19 }
 0x1dd   : > { %5953 = vrcp.f32 %v1535_v20  ;;  %v5154_v20 = vld [vmem:[%s7116_s27 + $0x2] ss:$0 sm:$0xff] }
 0x1e7   : > { %v5954_v23 = vpop.eup %5953 }
 0x1e8   : > { %v1537_v25 = vmul.f32 %v5954_v23, %v1527_v22 }
 0x1ea   : > { %v1544_v26 = vadd.f32 %v5135_v24, %v1537_v25 }
 0x1ec   : > { %v6504_v29 = vpack.c.bf16 %v1544_v26, %v1544_v26 }
 0x1ee   : > { %5430 = vmatmul.mubr.msk.bf16.vlgmr.msra.gmra.mrb[0].mxu0 %vm1508_vm1, %v6504_v29  ;;  %5438 = vmatmul.mubr.msk.bf16.vlgmr.msra.gmra.mrb[0].mxu1 %vm1508_vm1, %v6504_v29 }
 0x1ef   : > { %5442 = vmatpush3.bf16.msra.mxu0 %v5901_v27  ;;  %5450 = vmatpush3.bf16.msra.mxu1 %v5902_v28 }
 0x1f0   : > { %5443 = vmatprep.subr.bf16.mxu0 %v6130_v10  ;;  %5451 = vmatprep.subr.bf16.mxu1 %v6130_v10 }
 0x1f1   : > { %5445 = vmatprep.mubr.msk.bf16.mxu0 %vm6131_vm2, %v6130_v10  ;;  %5453 = vmatprep.mubr.msk.bf16.mxu1 %vm6131_vm2, %v6130_v10 }
 0x1f3   : > { %5444 = vmatpush3.bf16.msra.mxu0 %v5903_v30  ;;  %5452 = vmatpush3.bf16.msra.mxu1 %v5904_v31 }
 0x1f4   : > { %5457 = vmatprep.subr.bf16.mxu0 %v6130_v10  ;;  %5465 = vmatprep.subr.bf16.mxu1 %v6130_v10 }
 0x1f6   : > { %5446 = vmatmul.mubr.msk.bf16.vlgmr.msra.gmra.mrb[4].mxu0 %vm1508_vm1, %v6504_v29  ;;  %5454 = vmatmul.mubr.msk.bf16.vlgmr.msra.gmra.mrb[4].mxu1 %vm1508_vm1, %v6504_v29 }
 0x1f7   : > { %5458 = vmatpush3.bf16.msra.mxu0 %v5905_v32  ;;  %5466 = vmatpush3.bf16.msra.mxu1 %v5906_v33 }
 0x1f8   : > { %5459 = vmatprep.subr.bf16.mxu0 %v6130_v10  ;;  %5467 = vmatprep.subr.bf16.mxu1 %v6130_v10 }
 0x1f9   : > { %5461 = vmatprep.mubr.msk.bf16.mxu0 %vm6131_vm2, %v6130_v10  ;;  %5469 = vmatprep.mubr.msk.bf16.mxu1 %vm6131_vm2, %v6130_v10 }
 0x1fb   : > { %5460 = vmatpush3.bf16.msra.mxu0 %v5907_v34  ;;  %5468 = vmatpush3.bf16.msra.mxu1 %v5908_v35 }
 0x1fc   : > { %5473 = vmatprep.subr.bf16.mxu0 %v6130_v10  ;;  %5481 = vmatprep.subr.bf16.mxu1 %v6130_v10 }
 0x1fe   : > { %5462 = vmatmul.mubr.msk.bf16.vlgmr.msra.gmra.mrb[8].mxu0 %vm1508_vm1, %v6504_v29  ;;  %5470 = vmatmul.mubr.msk.bf16.vlgmr.msra.gmra.mrb[8].mxu1 %vm1508_vm1, %v6504_v29 }
 0x1ff   : > { %5474 = vmatpush3.bf16.msra.mxu0 %v5909_v36  ;;  %5482 = vmatpush3.bf16.msra.mxu1 %v5910_v37 }
 0x200   : > { %5475 = vmatprep.subr.bf16.mxu0 %v6130_v10  ;;  %5483 = vmatprep.subr.bf16.mxu1 %v6130_v10 }
 0x201   : > { %5477 = vmatprep.mubr.msk.bf16.mxu0 %vm6131_vm2, %v6130_v10  ;;  %5485 = vmatprep.mubr.msk.bf16.mxu1 %vm6131_vm2, %v6130_v10 }
 0x203   : > { %5476 = vmatpush3.bf16.msra.mxu0 %v5911_v38  ;;  %5484 = vmatpush3.bf16.msra.mxu1 %v5912_v39  ;;  %v5138_v38 = vld [vmem:[%s7117_s4 + $0x2] ss:$0 sm:$0xff]  ;;  %v5139_v39 = vld [vmem:[%s7117_s4 + $0x3] ss:$0 sm:$0xff] }
 0x204   : > { %5489 = vmatprep.subr.bf16.mxu0 %v6130_v10  ;;  %5497 = vmatprep.subr.bf16.mxu1 %v6130_v10 }
 0x206   : > { %5478 = vmatmul.mubr.msk.bf16.vlgmr.msra.gmra.mrb[12].mxu0 %vm1508_vm1, %v6504_v29  ;;  %5486 = vmatmul.mubr.msk.bf16.vlgmr.msra.gmra.mrb[12].mxu1 %vm1508_vm1, %v6504_v29 }
 0x207   : > { %5490 = vmatpush3.bf16.msra.mxu0 %v5913_v40  ;;  %5498 = vmatpush3.bf16.msra.mxu1 %v5914_v41 }
 0x208   : > { %5491 = vmatprep.subr.bf16.mxu0 %v6130_v10  ;;  %5499 = vmatprep.subr.bf16.mxu1 %v6130_v10 }
 0x209   : > { %5493 = vmatprep.mubr.msk.bf16.mxu0 %vm6131_vm2, %v6130_v10  ;;  %5501 = vmatprep.mubr.msk.bf16.mxu1 %vm6131_vm2, %v6130_v10 }
 0x20b   : > { %5492 = vmatpush3.bf16.msra.mxu0 %v5915_v42  ;;  %5500 = vmatpush3.bf16.msra.mxu1 %v5916_v43  ;;  %v5168_v42 = vld [vmem:[%s7118_s10] ss:$0 sm:$0xff]  ;;  %v5169_v43 = vld [vmem:[%s7118_s10 + $0x1] ss:$0 sm:$0xff] }
 0x20c   : > { %5505 = vmatprep.subr.bf16.mxu0 %v6130_v10  ;;  %5513 = vmatprep.subr.bf16.mxu1 %v6130_v10 }
 0x20e   : > { %5494 = vmatmul.mubr.msk.bf16.vlgmr.msra.gmra.mrb[16].mxu0 %vm1508_vm1, %v6504_v29  ;;  %5502 = vmatmul.mubr.msk.bf16.vlgmr.msra.gmra.mrb[16].mxu1 %vm1508_vm1, %v6504_v29 }
 0x20f   : > { %5506 = vmatpush3.bf16.msra.mxu0 %v5917_v44  ;;  %5514 = vmatpush3.bf16.msra.mxu1 %v5918_v45 }
 0x210   : > { %5507 = vmatprep.subr.bf16.mxu0 %v6130_v10  ;;  %5515 = vmatprep.subr.bf16.mxu1 %v6130_v10 }
 0x211   : > { %5509 = vmatprep.mubr.msk.bf16.mxu0 %vm6131_vm2, %v6130_v10  ;;  %5517 = vmatprep.mubr.msk.bf16.mxu1 %vm6131_vm2, %v6130_v10 }
 0x213   : > { %5508 = vmatpush3.bf16.msra.mxu0 %v5919_v46  ;;  %5516 = vmatpush3.bf16.msra.mxu1 %v5920_v47 }
 0x214   : > { %5521 = vmatprep.subr.bf16.mxu0 %v6130_v10  ;;  %5527 = vmatprep.subr.bf16.mxu1 %v6130_v10 }
 0x216   : > { %5510 = vmatmul.mubr.msk.bf16.vlgmr.msra.gmra.mrb[20].mxu0 %vm1508_vm1, %v6504_v29  ;;  %5518 = vmatmul.mubr.msk.bf16.vlgmr.msra.gmra.mrb[20].mxu1 %vm1508_vm1, %v6504_v29 }
 0x217   : > { %5523 = vmatprep.mubr.msk.bf16.mxu0 %vm6131_vm2, %v6130_v10  ;;  %5529 = vmatprep.mubr.msk.bf16.mxu1 %vm6131_vm2, %v6130_v10 }
 0x2c1   : > { %v1684_v48 = vpop.f32.mrb[0].mxu0  ;;  %v1736_v49 = vpop.f32.mrb[0].mxu1 }
 0x2c2   : > { %v5431_v50 = vpop.f32.mrb[1].mxu0  ;;  %v5439_v51 = vpop.f32.mrb[1].mxu1  ;;  %v1685_v22 = vadd.f32 %v5136_v16, %v1684_v48  ;;  %v1737_v23 = vadd.f32 %v5137_v17, %v1736_v49 }
 0x2c3   : > { %v1687_v52 = vpop.f32.mrb[2].mxu0  ;;  %v1739_v53 = vpop.f32.mrb[2].mxu1 }
 0x2c4   : > { %v5432_v54 = vpop.f32.mrb[3].mxu0  ;;  %v5440_v55 = vpop.f32.mrb[3].mxu1  ;;  %v2310_v32 = vpack.c.bf16 %v1685_v22, %v1685_v22  ;;  %v2311_v33 = vpack.c.bf16 %v1737_v23, %v1737_v23 }
 0x2c9   : > { %v1788_v56 = vpop.f32.mrb[4].mxu0  ;;  %v1840_v57 = vpop.f32.mrb[4].mxu1 }
 0x2ca   : > { %v5447_v58 = vpop.f32.mrb[5].mxu0  ;;  %v5455_v59 = vpop.f32.mrb[5].mxu1  ;;  %v1789_v44 = vadd.f32 %v5138_v38, %v1788_v56  ;;  %v1841_v45 = vadd.f32 %v5139_v39, %v1840_v57 }
 0x2cb   : > { %v1791_v60 = vpop.f32.mrb[6].mxu0  ;;  %v1843_v61 = vpop.f32.mrb[6].mxu1 }
 0x2cc   : > { %v5448_v62 = vpop.f32.mrb[7].mxu0  ;;  %v5456_v63 = vpop.f32.mrb[7].mxu1  ;;  %v2312_v54 = vpack.c.bf16 %v1789_v44, %v1789_v44  ;;  %v2313_v55 = vpack.c.bf16 %v1841_v45, %v1841_v45 }
 0x2d1   : > { %v1916_v3 = vpop.f32.mrb[8].mxu0  ;;  %v1968_v4 = vpop.f32.mrb[8].mxu1 }
 0x2d2   : > { %v1917_v5 = vadd.f32 %v5152_v0, %v1916_v3  ;;  %v1969_v6 = vadd.f32 %v5153_v2, %v1968_v4  ;;  %v5463_v7 = vpop.f32.mrb[9].mxu0  ;;  %v5471_v8 = vpop.f32.mrb[9].mxu1 }
 0x2d3   : > { %v1919_v9 = vpop.f32.mrb[10].mxu0  ;;  %v1971_v11 = vpop.f32.mrb[10].mxu1  ;;  %v1504_v7 = vld [vmem:[%s7119_s15] sm:$0xff] }
 0x2d4   : > { %v2314_v12 = vpack.c.bf16 %v1917_v5, %v1917_v5  ;;  %v2315_v13 = vpack.c.bf16 %v1969_v6, %v1969_v6  ;;  %v5464_v14 = vpop.f32.mrb[11].mxu0  ;;  %v5472_v15 = vpop.f32.mrb[11].mxu1 }
 0x2d6   : > { %v2323_v18 = vsel %vm2318_vm5, %v2314_v12, 0  ;;  %v2369_v19 = vsel %vm2318_vm5, %v2315_v13, 0 }
 0x2d7   : > { %5522 = vmatpush3.bf16.xpose.msra.mxu0 %v2323_v18  ;;  %5528 = vmatpush3.bf16.xpose.msra.mxu1 %v2369_v19 }
 0x2d8   : > { %5533 = vmatprep.subr.bf16.mxu0 %v6130_v10  ;;  %5539 = vmatprep.subr.bf16.mxu1 %v6130_v10 }
 0x2d9   : > { %v2020_v24 = vpop.f32.mrb[12].mxu0  ;;  %v2072_v25 = vpop.f32.mrb[12].mxu1 }
 0x2da   : > { %v2021_v26 = vadd.f32 %v5154_v20, %v2020_v24  ;;  %v2073_v27 = vadd.f32 %v5155_v21, %v2072_v25  ;;  %v5479_v28 = vpop.f32.mrb[13].mxu0  ;;  %v5487_v29 = vpop.f32.mrb[13].mxu1 }
 0x2db   : > { %v2023_v30 = vpop.f32.mrb[14].mxu0  ;;  %v2075_v31 = vpop.f32.mrb[14].mxu1 }
 0x2dc   : > { %v2316_v34 = vpack.c.bf16 %v2021_v26, %v2021_v26  ;;  %v2317_v35 = vpack.c.bf16 %v2073_v27, %v2073_v27  ;;  %v5480_v36 = vpop.f32.mrb[15].mxu0  ;;  %v5488_v37 = vpop.f32.mrb[15].mxu1 }
 0x2de   : > { %v2415_v40 = vsel %vm2318_vm5, %v2316_v34, 0  ;;  %v2461_v41 = vsel %vm2318_vm5, %v2317_v35, 0  ;;  %5524 = vmatmul.mubr.msk.bf16.vlgmr.msra.gmra.mrb[24].mxu0 %vm2318_vm5, %v2310_v32  ;;  %5530 = vmatmul.mubr.msk.bf16.vlgmr.msra.gmra.mrb[24].mxu1 %vm2318_vm5, %v2311_v33 }
 0x2df   : > { %5534 = vmatpush3.bf16.xpose.msra.mxu0 %v2415_v40  ;;  %5540 = vmatpush3.bf16.xpose.msra.mxu1 %v2461_v41 }
 0x2e0   : > { %5535 = vmatprep.mubr.msk.bf16.mxu0 %vm6131_vm2, %v6130_v10  ;;  %5541 = vmatprep.mubr.msk.bf16.mxu1 %vm6131_vm2, %v6130_v10 }
 0x2e1   : > { %v2148_v46 = vpop.f32.mrb[16].mxu0  ;;  %v2200_v47 = vpop.f32.mrb[16].mxu1  ;;  %5545 = vmatprep.subr.bf16.mxu0 %v6130_v10  ;;  %5551 = vmatprep.subr.bf16.mxu1 %v6130_v10 }
 0x2e2   : > { %v2149_v48 = vadd.f32 %v5168_v42, %v2148_v46  ;;  %v2201_v49 = vadd.f32 %v5169_v43, %v2200_v47  ;;  %v5495_v50 = vpop.f32.mrb[17].mxu0  ;;  %v5503_v51 = vpop.f32.mrb[17].mxu1 }
 0x2e3   : > { %v2151_v52 = vpop.f32.mrb[18].mxu0  ;;  %v2203_v53 = vpop.f32.mrb[18].mxu1 }
 0x2e4   : > { %v2551_v56 = vpack.c.bf16 %v2149_v48, %v2149_v48  ;;  %v2552_v57 = vpack.c.bf16 %v2201_v49, %v2201_v49  ;;  %v5496_v58 = vpop.f32.mrb[19].mxu0  ;;  %v5504_v59 = vpop.f32.mrb[19].mxu1 }
 0x2e5   : > { %v5171_v58 = vld [vmem:[%s7118_s10 + $0x3] ss:$0 sm:$0xff] }
 0x2e6   : > { %v2560_v60 = vsel %vm2558_vm6, %v2551_v56, 0  ;;  %v2606_v61 = vsel %vm2558_vm6, %v2552_v57, 0  ;;  %5536 = vmatmul.mubr.msk.bf16.vlgmr.msra.gmra.mrb[28].mxu0 %vm2318_vm5, %v2312_v54  ;;  %5542 = vmatmul.mubr.msk.bf16.vlgmr.msra.gmra.mrb[28].mxu1 %vm2318_vm5, %v2313_v55  ;;  %v5170_v55 = vld [vmem:[%s7118_s10 + $0x2] ss:$0 sm:$0xff] }
 0x2e7   : > { %5546 = vmatpush3.bf16.msra.mxu0 %v2560_v60  ;;  %5552 = vmatpush3.bf16.msra.mxu1 %v2606_v61 }
 0x2e8   : > { %5547 = vmatprep.mubr.msk.bf16.mxu0 %vm6131_vm2, %v6130_v10  ;;  %5557 = vmatprep.subr.bf16.mxu0 %v6130_v10 }
 0x2e9   : > { %v6623_v62 = vpop.f32.mrb[20].mxu0  ;;  %v6625_v63 = vpop.f32.mrb[20].mxu1  ;;  %5553 = vmatprep.mubr.msk.bf16.mxu1 %vm6131_vm2, %v6130_v10  ;;  %5563 = vmatprep.subr.bf16.mxu1 %v6130_v10 }
 0x2ea   : > { %v5511_v0 = vpop.f32.mrb[21].mxu0  ;;  %v5519_v2 = vpop.f32.mrb[21].mxu1  ;;  %v2253_v56 = vadd.f32 %v5170_v55, %v6623_v62 }
 0x2eb   : > { %v2255_v3 = vpop.f32.mrb[22].mxu0  ;;  %v2307_v4 = vpop.f32.mrb[22].mxu1  ;;  %v2305_v0 = vadd.f32 %v5171_v58, %v6625_v63 }
 0x2ec   : > { %v5512_v5 = vpop.f32.mrb[23].mxu0  ;;  %v5520_v6 = vpop.f32.mrb[23].mxu1  ;;  %v2553_v61 = vpack.c.bf16 %v2253_v56, %v2253_v56 }
 0x2ed   : > { %v2554_v6 = vpack.c.bf16 %v2305_v0, %v2305_v0 }
 0x2ee   : > { %v2652_v5 = vsel %vm2558_vm6, %v2553_v61, 0  ;;  %v5196_v61 = vld [vmem:[%s7122_s26] ss:$0 sm:$0xff] }
 0x2ef   : > { %v2698_v63 = vsel %vm2558_vm6, %v2554_v6, 0 }
 0x3b1   : > { %v2359_v8 = vpop.f32.mrb[24].mxu0  ;;  %v2405_v9 = vpop.f32.mrb[24].mxu1 }
 0x3b2   : > { %v2360_v11 = vadd.f32 %v2359_v8, %v1504_v7  ;;  %v5525_v12 = vpop.f32.mrb[25].mxu0  ;;  %v5531_v13 = vpop.f32.mrb[25].mxu1  ;;  %v2406_v16 = vadd.f32 %v2405_v9, %v1504_v7  ;;  %v1605_v9 = vld [vmem:[%s7120_s18] sm:$0xf] }
 0x3b3   : > { %v2362_v14 = vpop.f32.mrb[26].mxu0  ;;  %v2408_v15 = vpop.f32.mrb[26].mxu1 }
 0x3b4   : > { %v5526_v17 = vpop.f32.mrb[27].mxu0  ;;  %v5532_v18 = vpop.f32.mrb[27].mxu1  ;;  %v2503_v19 = vsel %vm2318_vm5, %v2360_v11, -inf  ;;  %v2506_v20 = vsel %vm2318_vm5, %v2406_v16, -inf  ;;  %v2748_v15 = vsel %vm2558_vm6, %v1605_v9, 0 }
 0x3b5   : > { %2504 = vmax.xlane.f32.xlu1 %v2503_v19  ;;  %v1606_v17 = vld [vmem:[%s7120_s18 + $0x4] sm:$0xf]  ;;  %v1607_v19 = vld [vmem:[%s7120_s18 + $0x8] sm:$0xf] }
 0x3b6   : > { %v2794_v18 = vsel %vm2558_vm6, %v1606_v17, 0 }
 0x3b9   : > { %v2451_v21 = vpop.f32.mrb[28].mxu0  ;;  %v2497_v22 = vpop.f32.mrb[28].mxu1  ;;  %2507 = vmax.xlane.f32.xlu1 %v2506_v20 }
 0x3ba   : > { %v2452_v23 = vadd.f32 %v2451_v21, %v1504_v7  ;;  %v2498_v24 = vadd.f32 %v2497_v22, %v1504_v7  ;;  %v5537_v25 = vpop.f32.mrb[29].mxu0  ;;  %v5543_v26 = vpop.f32.mrb[29].mxu1 }
 0x3bb   : > { %v2454_v27 = vpop.f32.mrb[30].mxu0  ;;  %v2500_v28 = vpop.f32.mrb[30].mxu1  ;;  %v1608_v25 = vld [vmem:[%s7120_s18 + $0xc] sm:$0xf] }
 0x3bc   : > { %v5538_v29 = vpop.f32.mrb[31].mxu0  ;;  %v5544_v30 = vpop.f32.mrb[31].mxu1  ;;  %v2509_v31 = vsel %vm2318_vm5, %v2452_v23, -inf  ;;  %v2512_v32 = vsel %vm2318_vm5, %v2498_v24, -inf }
 0x3bd   : > { %2510 = vmax.xlane.f32.xlu0 %v2509_v31  ;;  %2513 = vmax.xlane.f32.xlu1 %v2512_v32  ;;  %v2886_v30 = vsel %vm2558_vm6, %v1608_v25, 0 }
 0x442   : > { %v2505_v33 = vpop.xlane.xlu1 %2504 }
 0x443   : > { %v2515_v34 = vsub.f32 %v2360_v11, %v2505_v33 }
 0x445   : > { %v2519_v35 = vmul.f32 1.442695, %v2515_v34 }
 0x446   : > { %v2508_v36 = vpop.xlane.xlu1 %2507 }
 0x447   : > { %5955 = vpow2.f32 %v2519_v35  ;;  %v2516_v37 = vsub.f32 %v2406_v16, %v2508_v36 }
 0x449   : > { %v2521_v38 = vmul.f32 1.442695, %v2516_v37 }
 0x44a   : > { %v2511_v39 = vpop.xlane.xlu0 %2510  ;;  %v2514_v40 = vpop.xlane.xlu1 %2513 }
 0x44b   : > { %5957 = vpow2.f32 %v2521_v38  ;;  %v2517_v41 = vsub.f32 %v2452_v23, %v2511_v39  ;;  %v2518_v42 = vsub.f32 %v2498_v24, %v2514_v40  ;;  %v2840_v23 = vsel %vm2558_vm6, %v1607_v19, 0 }
 0x44d   : > { %v2523_v43 = vmul.f32 1.442695, %v2517_v41  ;;  %v2525_v44 = vmul.f32 1.442695, %v2518_v42 }
 0x44f   : > { %5959 = vpow2.f32 %v2523_v43 }
 0x450   : > { %5961 = vpow2.f32 %v2525_v44 }
 0x451   : > { %v5956_v45 = vpop.eup %5955 }
 0x452   : > { %v2527_v46 = vsel %vm2318_vm5, %v5956_v45, 0.0 }
 0x453   : > { %2528 = vadd.xlane.f32.xlu0 %v2527_v46 }
 0x455   : > { %v5958_v47 = vpop.eup %5957 }
 0x456   : > { %v2530_v48 = vsel %vm2318_vm5, %v5958_v47, 0.0 }
 0x457   : > { %2531 = vadd.xlane.f32.xlu1 %v2530_v48 }
 0x459   : > { %v5960_v49 = vpop.eup %5959 }
 0x45a   : > { %v5962_v50 = vpop.eup %5961  ;;  %v2533_v51 = vsel %vm2318_vm5, %v5960_v49, 0.0 }
 0x45b   : > { %2534 = vadd.xlane.f32.xlu0 %v2533_v51  ;;  %v2536_v52 = vsel %vm2318_vm5, %v5962_v50, 0.0 }
 0x45c   : > { %2537 = vadd.xlane.f32.xlu1 %v2536_v52 }
 0x4e0   : > { %v2529_v53 = vpop.xlane.xlu0 %2528 }
 0x4e1   : > { %5963 = vrcp.f32 %v2529_v53 }
 0x4e4   : > { %v2532_v54 = vpop.xlane.xlu1 %2531 }
 0x4e5   : > { %5965 = vrcp.f32 %v2532_v54 }
 0x4e8   : > { %v2535_v57 = vpop.xlane.xlu0 %2534 }
 0x4e9   : > { %5967 = vrcp.f32 %v2535_v57  ;;  %v2538_v59 = vpop.xlane.xlu1 %2537 }
 0x4ea   : > { %5969 = vrcp.f32 %v2538_v59 }
 0x4eb   : > { %v5964_v60 = vpop.eup %5963 }
 0x4ec   : > { %v2543_v2 = vmul.f32 %v5964_v60, %v5956_v45 }
 0x4ee   : > { %v2547_v3 = vpack.c.bf16 %v2543_v2, %v2543_v2 }
 0x4ef   : > { %v5966_v4 = vpop.eup %5965 }
 0x4f0   : > { %v2544_v7 = vmul.f32 %v5966_v4, %v5958_v47  ;;  %5548 = vmatmul.mubr.msk.bf16.vlgmr.msra.gmra.mrb[32].mxu0 %vm2318_vm5, %v2547_v3 }
 0x4f1   : > { %5558 = vmatpush3.bf16.msra.mxu0 %v2652_v5  ;;  %5559 = vmatprep.mubr.msk.bf16.mxu0 %vm6131_vm2, %v6130_v10 }
 0x4f2   : > { %v2548_v62 = vpack.c.bf16 %v2544_v7, %v2544_v7  ;;  %5569 = vmatprep.subr.bf16.mxu0 %v6130_v10 }
 0x4f3   : > { %v5968_v8 = vpop.eup %5967 }
 0x4f4   : > { %v5970_v11 = vpop.eup %5969  ;;  %v2545_v12 = vmul.f32 %v5968_v8, %v5960_v49  ;;  %5554 = vmatmul.mubr.msk.bf16.vlgmr.msra.gmra.mrb[32].mxu1 %vm2318_vm5, %v2548_v62 }
 0x4f5   : > { %5564 = vmatpush3.bf16.msra.mxu1 %v2698_v63  ;;  %5565 = vmatprep.mubr.msk.bf16.mxu1 %vm6131_vm2, %v6130_v10  ;;  %v2546_v13 = vmul.f32 %v5970_v11, %v5962_v50 }
 0x4f6   : > { %v2549_v14 = vpack.c.bf16 %v2545_v12, %v2545_v12  ;;  %5575 = vmatprep.subr.bf16.mxu1 %v6130_v10 }
 0x4f7   : > { %v2550_v16 = vpack.c.bf16 %v2546_v13, %v2546_v13  ;;  %v5921_v13 = vld [vmem:[%s7123_s22] sm:$0xff]  }
 0x4f8   : > { %5560 = vmatmul.mubr.msk.bf16.vlgmr.msra.gmra.mrb[36].mxu0 %vm2318_vm5, %v2549_v14  ;;  %v5922_v14 = vld [vmem:[%s7123_s22 + $0x10] sm:$0xff]  }
 0x4f9   : > { %5570 = vmatpush3.bf16.msra.mxu0 %v2748_v15  ;;  %5571 = vmatprep.mubr.msk.bf16.mxu0 %vm6131_vm2, %v6130_v10  ;;  %v5924_v15 = vld [vmem:[%s7123_s22 + $0x18] sm:$0xff]  }
 0x4fa   : > { %5581 = vmatprep.subr.bf16.mxu0 %v6130_v10 }
 0x4fc   : > { %5566 = vmatmul.mubr.msk.bf16.vlgmr.msra.gmra.mrb[36].mxu1 %vm2318_vm5, %v2550_v16 }
 0x4fd   : > { %5577 = vmatprep.mubr.msk.bf16.mxu1 %vm6131_vm2, %v6130_v10  ;;  %5576 = vmatpush3.bf16.msra.mxu1 %v2794_v18 }
 0x4fe   : > { %5587 = vmatprep.subr.bf16.mxu1 %v6130_v10 }
 0x5c3   : > { %v2596_v20 = vpop.f32.mrb[32].mxu0 }
 0x5c4   : > { %v2740_v21 = vpack.c.bf16 %v2596_v20, %v2596_v20  ;;  %v5549_v22 = vpop.f32.mrb[33].mxu0 }
 0x5c5   : > { %v2599_v24 = vpop.f32.mrb[34].mxu0 }
 0x5c6   : > { %v5550_v26 = vpop.f32.mrb[35].mxu0  ;;  %5572 = vmatmul.mubr.msk.bf16.vlgmr.msra.gmra.mrb[40].mxu0 %vm2318_vm5, %v2740_v21  ;;  %v5197_v24 = vld [vmem:[%s7126_s5] ss:$0 sm:$0xff] }
 0x5c7   : > { %v2642_v27 = vpop.f32.mrb[32].mxu1  ;;  %5582 = vmatpush3.bf16.msra.mxu0 %v2840_v23  ;;  %5583 = vmatprep.mubr.msk.bf16.mxu0 %vm6131_vm2, %v6130_v10 }
 0x5c8   : > { %v2741_v28 = vpack.c.bf16 %v2642_v27, %v2642_v27  ;;  %v5555_v29 = vpop.f32.mrb[33].mxu1  ;;  %5593 = vmatprep.subr.bf16.mxu0 %v6130_v10  ;;  %v5198_v27 = vld [vmem:[%s7127_s9] ss:$0 sm:$0xff] }
 0x5c9   : > { %v2645_v31 = vpop.f32.mrb[34].mxu1 }
 0x5ca   : > { %v5556_v32 = vpop.f32.mrb[35].mxu1  ;;  %5578 = vmatmul.mubr.msk.bf16.vlgmr.msra.gmra.mrb[40].mxu1 %vm2318_vm5, %v2741_v28  ;;  %v5926_v31 = vld [vmem:[%s7123_s22 + $0x30] sm:$0xff]  }
 0x5cb   : > { %v2688_v33 = vpop.f32.mrb[36].mxu0  ;;  %5588 = vmatpush3.bf16.msra.mxu1 %v2886_v30  ;;  %5589 = vmatprep.mubr.msk.bf16.mxu1 %vm6131_vm2, %v6130_v10  ;;  %v5925_v30 = vld [vmem:[%s7123_s22 + $0x20] sm:$0xff]  }
 0x5cc   : > { %v2742_v34 = vpack.c.bf16 %v2688_v33, %v2688_v33  ;;  %v5561_v35 = vpop.f32.mrb[37].mxu0  ;;  %5601 = vmatprep.subr.bf16.mxu1 %v6130_v10  ;;  %v5927_v33 = vld [vmem:[%s7123_s22 + $0x28] sm:$0xff]  }
 0x5cd   : > { %v2691_v36 = vpop.f32.mrb[38].mxu0  ;;  %v5929_v35 = vld [vmem:[%s6442_s19] sm:$0xff]  }
 0x5ce   : > { %v5562_v37 = vpop.f32.mrb[39].mxu0  ;;  %5584 = vmatmul.mubr.msk.bf16.vlgmr.msra.gmra.mrb[44].mxu0 %vm2318_vm5, %v2742_v34  ;;  %v5928_v34 = vld [vmem:[%s7123_s22 + $0x38] sm:$0xff]   ;;  %v5930_v36 = vld [vmem:[%s6442_s19 + $0x10] sm:$0xff]  }
 0x5cf   : > { %v2734_v38 = vpop.f32.mrb[36].mxu1  ;;  %5597 = vmatprep.mubr.msk.bf16.mxu0 %vm6131_vm2, %v6130_v10  ;;  %5594 = vmatpush3.bf16.msra.mxu0 %v5921_v13  ;;  %v5931_v37 = vld [vmem:[%s6442_s19 + $0x8] sm:$0xff]  }
 0x5d0   : > { %v2743_v39 = vpack.c.bf16 %v2734_v38, %v2734_v38  ;;  %v5567_v40 = vpop.f32.mrb[37].mxu1  ;;  %5595 = vmatprep.subr.bf16.mxu0 %v6130_v10  ;;  %v5932_v38 = vld [vmem:[%s6442_s19 + $0x18] sm:$0xff]  }
 0x5d1   : > { %v2737_v41 = vpop.f32.mrb[38].mxu1  ;;  %v5934_v40 = vld [vmem:[%s6442_s19 + $0x30] sm:$0xff]  }
 0x5d2   : > { %v5568_v42 = vpop.f32.mrb[39].mxu1  ;;  %5590 = vmatmul.mubr.msk.bf16.vlgmr.msra.gmra.mrb[44].mxu1 %vm2318_vm5, %v2743_v39  ;;  %v5933_v39 = vld [vmem:[%s6442_s19 + $0x20] sm:$0xff]   ;;  %v5935_v41 = vld [vmem:[%s6442_s19 + $0x28] sm:$0xff]  }
 0x5d3   : > { %5605 = vmatprep.mubr.msk.bf16.mxu1 %vm6131_vm2, %v6130_v10  ;;  %5602 = vmatpush3.bf16.msra.mxu1 %v5922_v14  ;;  %v5936_v42 = vld [vmem:[%s6442_s19 + $0x38] sm:$0xff]   ;;  %s7128_s19 = sld [smem:[#allocation65_spill]] }
 0x5d4   : > { %5603 = vmatprep.subr.bf16.mxu1 %v6130_v10 }
 0x5d7   : > { %5604 = vmatpush3.bf16.msra.mxu1 %v5924_v15 }
 0x5d8   : > { %5617 = vmatprep.subr.bf16.mxu1 %v6130_v10 }
 0x699   : > { %v2784_v43 = vpop.f32.mrb[40].mxu0 }
 0x69a   : > { %v5573_v44 = vpop.f32.mrb[41].mxu0  ;;  %v2928_v48 = vsel %vm1508_vm1, %v2784_v43, 0.0  ;;  %v5937_v43 = vld [vmem:[%s6448_s0] sm:$0xff]  }
 0x69b   : > { %v2787_v45 = vpop.f32.mrb[42].mxu0  ;;  %v5938_v44 = vld [vmem:[%s6448_s0 + $0x10] sm:$0xff]  }
 0x69c   : > { %v5574_v46 = vpop.f32.mrb[43].mxu0  ;;  %v5939_v45 = vld [vmem:[%s6448_s0 + $0x8] sm:$0xff]  }
 0x69d   : > { %v2830_v47 = vpop.f32.mrb[40].mxu1  ;;  %v5940_v46 = vld [vmem:[%s6448_s0 + $0x18] sm:$0xff]  }
 0x69e   : > { %v2929_v49 = vsel %vm1508_vm1, %v2830_v47, 0.0  ;;  %v5579_v50 = vpop.f32.mrb[41].mxu1  ;;  %v5941_v47 = vld [vmem:[%s6448_s0 + $0x20] sm:$0xff]  }
 0x69f   : > { %v2930_v51 = vadd.f32 %v2929_v49, %v2928_v48  ;;  %v2833_v52 = vpop.f32.mrb[42].mxu1  ;;  %v5942_v48 = vld [vmem:[%s6448_s0 + $0x30] sm:$0xff]   ;;  %v5943_v49 = vld [vmem:[%s6448_s0 + $0x28] sm:$0xff]   ;;  %v5944_v50 = vld [vmem:[%s6448_s0 + $0x38] sm:$0xff]   ;;  %s7130_s0 = sld [smem:[#allocation54_spill]] }
 0x6a0   : > { %v5580_v53 = vpop.f32.mrb[43].mxu1 }
 0x6a1   : > { %v2876_v54 = vpop.f32.mrb[44].mxu0 }
 0x6a2   : > { %v2931_v55 = vsel %vm1508_vm1, %v2876_v54, 0.0  ;;  %v5585_v56 = vpop.f32.mrb[45].mxu0 }
 0x6a3   : > { %v2932_v57 = vadd.f32 %v2931_v55, %v2930_v51  ;;  %v2879_v58 = vpop.f32.mrb[46].mxu0 }
 0x6a4   : > { %v5586_v59 = vpop.f32.mrb[47].mxu0 }
 0x6a5   : > { %v2922_v60 = vpop.f32.mrb[44].mxu1 }
 0x6a6   : > { %v2933_v0 = vsel %vm1508_vm1, %v2922_v60, 0.0  ;;  %v5591_v2 = vpop.f32.mrb[45].mxu1 }
 0x6a7   : > { %v2934_v3 = vadd.f32 %v2933_v0, %v2932_v57  ;;  %v2925_v4 = vpop.f32.mrb[46].mxu1 }
 0x6a8   : > { %v5592_v5 = vpop.f32.mrb[47].mxu1 }
 0x6a9   : > { %v2941_v6 = vadd.f32 %v5196_v61, %v2934_v3 }
 0x6ab   : > { %v6691_v7 = vadd.f32 %v2941_v6, %v6476_v1  ;;  %v5923_v1 = vld [vmem:[%s7123_s22 + $0x8] sm:$0xff]   ;;  %v5215_v6 = vld [vmem:[%s6445_s21] ss:$0 sm:$0xff] }
 0x6ac   : > { %5596 = vmatpush3.bf16.msra.mxu0 %v5923_v1 }
 0x6ad   : > { %v2945_v62 = vsel %vm1508_vm1, %v6691_v7, 0.0  ;;  %5609 = vmatprep.subr.bf16.mxu0 %v6130_v10 }
 0x6ae   : > { %2946 = vadd.xlane.f32.xlu0 %v2945_v62  ;;  %v5216_v62 = vld [vmem:[%s6445_s21 + $0x1] ss:$0 sm:$0xff] }
 0x73b   : > { %v2947_v8 = vpop.xlane.xlu0 %2946 }
 0x73c   : > { %v2948_v9 = vmul.f32 0.03125, %v2947_v8 }
 0x73e   : > { %v2949_v11 = vsub.f32 %v6691_v7, %v2948_v9 }
 0x740   : > { %v2950_v63 = vmul.f32 %v2949_v11, %v2949_v11  ;;  %v2961_v25 = vmul.f32 %v5197_v24, %v2949_v11  ;;  %v5218_v24 = vld [vmem:[%s6445_s21 + $0x3] ss:$0 sm:$0xff] }
 0x742   : > { %v2951_v12 = vsel %vm1508_vm1, %v2950_v63, 0.0 }
 0x743   : > { %2952 = vadd.xlane.f32.xlu1 %v2951_v12 }
 0x7d0   : > { %v2953_v16 = vpop.xlane.xlu1 %2952 }
 0x7d1   : > { %v2954_v17 = vmul.f32 0.032258064, %v2953_v16 }
 0x7d3   : > { %5971 = vrsqrt.f32 %v2954_v17  ;;  %vm2964_vm7 = vcmp.eq.f32.partialorder %v2954_v17, inf  ;;  %v2967_v20 = vand.u32 2147483648, %v2954_v17  ;;  %vm2966_vm8 = vcmp.eq.f32.partialorder %v2954_v17, 0.0 }
 0x7dd   : > { %v5972_v18 = vpop.eup %5971 }
 0x7de   : > { %v2963_v19 = vmul.f32 %v5972_v18, %v2954_v17 }
 0x7e0   : > { %v2965_v21 = vsel %vm2964_vm7, %v2954_v17, %v2963_v19  ;;  %v5199_v19 = vld [vmem:[%s7128_s19] ss:$0 sm:$0xff] }
 0x7e1   : > { %v2968_v22 = vsel %vm2966_vm8, %v2967_v20, %v2965_v21  ;;  %v5200_v20 = vld [vmem:[%s7128_s19 + $0x1] ss:$0 sm:$0xff] }
 0x7e2   : > { %v2969_v23 = vadd.f32 1e-06, %v2968_v22 }
 0x7e4   : > { %5973 = vrcp.f32 %v2969_v23  ;;  %v5217_v23 = vld [vmem:[%s6445_s21 + $0x2] ss:$0 sm:$0xff]  ;;  %s7129_s21 = sld [smem:[#allocation7_spill]] }
 0x7ea   : > { %s7131_s17 = scalar_lea.vmem %s7129_s21, %s7130_s0 }
 0x7ee   : > { %v5974_v26 = vpop.eup %5973 }
 0x7ef   : > { %v2971_v28 = vmul.f32 %v5974_v26, %v2961_v25 }
 0x7f1   : > { %v2978_v29 = vadd.f32 %v5198_v27, %v2971_v28 }
 0x7f3   : > { %v6713_v32 = vpack.c.bf16 %v2978_v29, %v2978_v29 }
 0x7f5   : > { %5598 = vmatmul.mubr.msk.bf16.vlgmr.msra.gmra.mrb[48].mxu0 %vm1508_vm1, %v6713_v32  ;;  %5606 = vmatmul.mubr.msk.bf16.vlgmr.msra.gmra.mrb[48].mxu1 %vm1508_vm1, %v6713_v32 }
 0x7f6   : > { %5610 = vmatpush3.bf16.msra.mxu0 %v5925_v30  ;;  %5618 = vmatpush3.bf16.msra.mxu1 %v5926_v31 }
 0x7f7   : > { %5611 = vmatprep.subr.bf16.mxu0 %v6130_v10  ;;  %5619 = vmatprep.subr.bf16.mxu1 %v6130_v10 }
 0x7f8   : > { %5613 = vmatprep.mubr.msk.bf16.mxu0 %vm6131_vm2, %v6130_v10  ;;  %5621 = vmatprep.mubr.msk.bf16.mxu1 %vm6131_vm2, %v6130_v10 }
 0x7fa   : > { %5612 = vmatpush3.bf16.msra.mxu0 %v5927_v33  ;;  %5620 = vmatpush3.bf16.msra.mxu1 %v5928_v34 }
 0x7fb   : > { %5625 = vmatprep.subr.bf16.mxu0 %v6130_v10  ;;  %5633 = vmatprep.subr.bf16.mxu1 %v6130_v10 }
 0x7fd   : > { %5614 = vmatmul.mubr.msk.bf16.vlgmr.msra.gmra.mrb[52].mxu0 %vm1508_vm1, %v6713_v32  ;;  %5622 = vmatmul.mubr.msk.bf16.vlgmr.msra.gmra.mrb[52].mxu1 %vm1508_vm1, %v6713_v32 }
 0x7fe   : > { %5626 = vmatpush3.bf16.msra.mxu0 %v5929_v35  ;;  %5634 = vmatpush3.bf16.msra.mxu1 %v5930_v36 }
 0x7ff   : > { %5627 = vmatprep.subr.bf16.mxu0 %v6130_v10  ;;  %5635 = vmatprep.subr.bf16.mxu1 %v6130_v10 }
 0x800   : > { %5629 = vmatprep.mubr.msk.bf16.mxu0 %vm6131_vm2, %v6130_v10  ;;  %5637 = vmatprep.mubr.msk.bf16.mxu1 %vm6131_vm2, %v6130_v10 }
 0x802   : > { %5628 = vmatpush3.bf16.msra.mxu0 %v5931_v37  ;;  %5636 = vmatpush3.bf16.msra.mxu1 %v5932_v38 }
 0x803   : > { %5641 = vmatprep.subr.bf16.mxu0 %v6130_v10  ;;  %5649 = vmatprep.subr.bf16.mxu1 %v6130_v10 }
 0x805   : > { %5630 = vmatmul.mubr.msk.bf16.vlgmr.msra.gmra.mrb[56].mxu0 %vm1508_vm1, %v6713_v32  ;;  %5638 = vmatmul.mubr.msk.bf16.vlgmr.msra.gmra.mrb[56].mxu1 %vm1508_vm1, %v6713_v32 }
 0x806   : > { %5642 = vmatpush3.bf16.msra.mxu0 %v5933_v39  ;;  %5650 = vmatpush3.bf16.msra.mxu1 %v5934_v40 }
 0x807   : > { %5643 = vmatprep.subr.bf16.mxu0 %v6130_v10  ;;  %5651 = vmatprep.subr.bf16.mxu1 %v6130_v10 }
 0x808   : > { %5645 = vmatprep.mubr.msk.bf16.mxu0 %vm6131_vm2, %v6130_v10  ;;  %5653 = vmatprep.mubr.msk.bf16.mxu1 %vm6131_vm2, %v6130_v10 }
 0x80a   : > { %5644 = vmatpush3.bf16.msra.mxu0 %v5935_v41  ;;  %5652 = vmatpush3.bf16.msra.mxu1 %v5936_v42  ;;  %v5201_v41 = vld [vmem:[%s7128_s19 + $0x2] ss:$0 sm:$0xff]  ;;  %v5202_v42 = vld [vmem:[%s7128_s19 + $0x3] ss:$0 sm:$0xff] }
 0x80b   : > { %5657 = vmatprep.subr.bf16.mxu0 %v6130_v10  ;;  %5665 = vmatprep.subr.bf16.mxu1 %v6130_v10 }
 0x80d   : > { %5646 = vmatmul.mubr.msk.bf16.vlgmr.msra.gmra.mrb[60].mxu0 %vm1508_vm1, %v6713_v32  ;;  %5654 = vmatmul.mubr.msk.bf16.vlgmr.msra.gmra.mrb[60].mxu1 %vm1508_vm1, %v6713_v32 }
 0x80e   : > { %5658 = vmatpush3.bf16.msra.mxu0 %v5937_v43  ;;  %5666 = vmatpush3.bf16.msra.mxu1 %v5938_v44 }
 0x80f   : > { %5659 = vmatprep.subr.bf16.mxu0 %v6130_v10  ;;  %5667 = vmatprep.subr.bf16.mxu1 %v6130_v10 }
 0x810   : > { %5661 = vmatprep.mubr.msk.bf16.mxu0 %vm6131_vm2, %v6130_v10  ;;  %5669 = vmatprep.mubr.msk.bf16.mxu1 %vm6131_vm2, %v6130_v10 }
 0x812   : > { %5660 = vmatpush3.bf16.msra.mxu0 %v5939_v45  ;;  %5668 = vmatpush3.bf16.msra.mxu1 %v5940_v46  ;;  %v5231_v45 = vld [vmem:[%s6451_s30] ss:$0 sm:$0xff]  ;;  %v5232_v46 = vld [vmem:[%s6451_s30 + $0x1] ss:$0 sm:$0xff] }
 0x813   : > { %5673 = vmatprep.subr.bf16.mxu0 %v6130_v10  ;;  %5681 = vmatprep.subr.bf16.mxu1 %v6130_v10 }
 0x815   : > { %5662 = vmatmul.mubr.msk.bf16.vlgmr.msra.gmra.mrb[64].mxu0 %vm1508_vm1, %v6713_v32  ;;  %5670 = vmatmul.mubr.msk.bf16.vlgmr.msra.gmra.mrb[64].mxu1 %vm1508_vm1, %v6713_v32 }
 0x816   : > { %5674 = vmatpush3.bf16.msra.mxu0 %v5941_v47  ;;  %5682 = vmatpush3.bf16.msra.mxu1 %v5942_v48 }
 0x817   : > { %5675 = vmatprep.subr.bf16.mxu0 %v6130_v10  ;;  %5683 = vmatprep.subr.bf16.mxu1 %v6130_v10 }
 0x818   : > { %5677 = vmatprep.mubr.msk.bf16.mxu0 %vm6131_vm2, %v6130_v10  ;;  %5685 = vmatprep.mubr.msk.bf16.mxu1 %vm6131_vm2, %v6130_v10 }
 0x81a   : > { %5676 = vmatpush3.bf16.msra.mxu0 %v5943_v49  ;;  %5684 = vmatpush3.bf16.msra.mxu1 %v5944_v50 }
 0x81b   : > { %5689 = vmatprep.subr.bf16.mxu0 %v6130_v10  ;;  %5695 = vmatprep.subr.bf16.mxu1 %v6130_v10 }
 0x81d   : > { %5678 = vmatmul.mubr.msk.bf16.vlgmr.msra.gmra.mrb[68].mxu0 %vm1508_vm1, %v6713_v32  ;;  %5686 = vmatmul.mubr.msk.bf16.vlgmr.msra.gmra.mrb[68].mxu1 %vm1508_vm1, %v6713_v32 }
 0x81e   : > { %5691 = vmatprep.mubr.msk.bf16.mxu0 %vm6131_vm2, %v6130_v10  ;;  %5697 = vmatprep.mubr.msk.bf16.mxu1 %vm6131_vm2, %v6130_v10 }
 0x8c8   : > { %v3118_v51 = vpop.f32.mrb[48].mxu0  ;;  %v3170_v52 = vpop.f32.mrb[48].mxu1 }
 0x8c9   : > { %v5599_v53 = vpop.f32.mrb[49].mxu0  ;;  %v5607_v54 = vpop.f32.mrb[49].mxu1  ;;  %v3119_v25 = vadd.f32 %v5199_v19, %v3118_v51  ;;  %v3171_v26 = vadd.f32 %v5200_v20, %v3170_v52 }
 0x8ca   : > { %v3121_v55 = vpop.f32.mrb[50].mxu0  ;;  %v3173_v56 = vpop.f32.mrb[50].mxu1 }
 0x8cb   : > { %v5600_v57 = vpop.f32.mrb[51].mxu0  ;;  %v5608_v58 = vpop.f32.mrb[51].mxu1  ;;  %v3744_v35 = vpack.c.bf16 %v3119_v25, %v3119_v25  ;;  %v3745_v36 = vpack.c.bf16 %v3171_v26, %v3171_v26 }
 0x8d0   : > { %v3222_v59 = vpop.f32.mrb[52].mxu0  ;;  %v3274_v60 = vpop.f32.mrb[52].mxu1 }
 0x8d1   : > { %v5615_v61 = vpop.f32.mrb[53].mxu0  ;;  %v5623_v0 = vpop.f32.mrb[53].mxu1  ;;  %v3223_v47 = vadd.f32 %v5201_v41, %v3222_v59  ;;  %v3275_v48 = vadd.f32 %v5202_v42, %v3274_v60 }
 0x8d2   : > { %v3225_v2 = vpop.f32.mrb[54].mxu0  ;;  %v3277_v3 = vpop.f32.mrb[54].mxu1 }
 0x8d3   : > { %v5616_v4 = vpop.f32.mrb[55].mxu0  ;;  %v5624_v5 = vpop.f32.mrb[55].mxu1  ;;  %v3746_v57 = vpack.c.bf16 %v3223_v47, %v3223_v47  ;;  %v3747_v58 = vpack.c.bf16 %v3275_v48, %v3275_v48 }
 0x8d8   : > { %v3350_v8 = vpop.f32.mrb[56].mxu0  ;;  %v3402_v9 = vpop.f32.mrb[56].mxu1 }
 0x8d9   : > { %v3351_v11 = vadd.f32 %v5215_v6, %v3350_v8  ;;  %v3403_v63 = vadd.f32 %v5216_v62, %v3402_v9  ;;  %v5631_v12 = vpop.f32.mrb[57].mxu0  ;;  %v5639_v13 = vpop.f32.mrb[57].mxu1 }
 0x8da   : > { %v3353_v14 = vpop.f32.mrb[58].mxu0  ;;  %v3405_v1 = vpop.f32.mrb[58].mxu1  ;;  %v5247_v12 = vld [vmem:[%s7131_s17] ss:$0 sm:$0xff] }
 0x8db   : > { %v3748_v15 = vpack.c.bf16 %v3351_v11, %v3351_v11  ;;  %v3749_v16 = vpack.c.bf16 %v3403_v63, %v3403_v63  ;;  %v5632_v17 = vpop.f32.mrb[59].mxu0  ;;  %v5640_v18 = vpop.f32.mrb[59].mxu1 }
 0x8dd   : > { %v3762_v21 = vsel %vm2318_vm5, %v3748_v15, 0  ;;  %v3808_v22 = vsel %vm2318_vm5, %v3749_v16, 0 }
 0x8de   : > { %5690 = vmatpush3.bf16.xpose.msra.mxu0 %v3762_v21  ;;  %5696 = vmatpush3.bf16.xpose.msra.mxu1 %v3808_v22 }
 0x8df   : > { %5701 = vmatprep.subr.bf16.mxu0 %v6130_v10  ;;  %5707 = vmatprep.subr.bf16.mxu1 %v6130_v10 }
 0x8e0   : > { %v3454_v27 = vpop.f32.mrb[60].mxu0  ;;  %v3506_v28 = vpop.f32.mrb[60].mxu1 }
 0x8e1   : > { %v3455_v29 = vadd.f32 %v5217_v23, %v3454_v27  ;;  %v3507_v30 = vadd.f32 %v5218_v24, %v3506_v28  ;;  %v5647_v31 = vpop.f32.mrb[61].mxu0  ;;  %v5655_v32 = vpop.f32.mrb[61].mxu1 }
 0x8e2   : > { %v3457_v33 = vpop.f32.mrb[62].mxu0  ;;  %v3509_v34 = vpop.f32.mrb[62].mxu1 }
 0x8e3   : > { %v3750_v37 = vpack.c.bf16 %v3455_v29, %v3455_v29  ;;  %v3751_v38 = vpack.c.bf16 %v3507_v30, %v3507_v30  ;;  %v5648_v39 = vpop.f32.mrb[63].mxu0  ;;  %v5656_v40 = vpop.f32.mrb[63].mxu1 }
 0x8e5   : > { %v3854_v43 = vsel %vm2318_vm5, %v3750_v37, 0  ;;  %v3900_v44 = vsel %vm2318_vm5, %v3751_v38, 0  ;;  %5692 = vmatmul.mubr.msk.bf16.vlgmr.msra.gmra.mrb[72].mxu0 %vm2318_vm5, %v3744_v35  ;;  %5698 = vmatmul.mubr.msk.bf16.vlgmr.msra.gmra.mrb[72].mxu1 %vm2318_vm5, %v3745_v36 }
 0x8e6   : > { %5702 = vmatpush3.bf16.xpose.msra.mxu0 %v3854_v43  ;;  %5708 = vmatpush3.bf16.xpose.msra.mxu1 %v3900_v44 }
 0x8e7   : > { %5703 = vmatprep.mubr.msk.bf16.mxu0 %vm6131_vm2, %v6130_v10  ;;  %5709 = vmatprep.mubr.msk.bf16.mxu1 %vm6131_vm2, %v6130_v10 }
 0x8e8   : > { %v3582_v49 = vpop.f32.mrb[64].mxu0  ;;  %v3634_v50 = vpop.f32.mrb[64].mxu1  ;;  %5713 = vmatprep.subr.bf16.mxu0 %v6130_v10  ;;  %5719 = vmatprep.subr.bf16.mxu1 %v6130_v10 }
 0x8e9   : > { %v3583_v51 = vadd.f32 %v5231_v45, %v3582_v49  ;;  %v3635_v52 = vadd.f32 %v5232_v46, %v3634_v50  ;;  %v5663_v53 = vpop.f32.mrb[65].mxu0  ;;  %v5671_v54 = vpop.f32.mrb[65].mxu1 }
 0x8ea   : > { %v3585_v55 = vpop.f32.mrb[66].mxu0  ;;  %v3637_v56 = vpop.f32.mrb[66].mxu1 }
 0x8eb   : > { %v3990_v59 = vpack.c.bf16 %v3583_v51, %v3583_v51  ;;  %v3991_v60 = vpack.c.bf16 %v3635_v52, %v3635_v52  ;;  %v5664_v61 = vpop.f32.mrb[67].mxu0  ;;  %v5672_v0 = vpop.f32.mrb[67].mxu1 }
 0x8ed   : > { %v3998_v2 = vsel %vm2558_vm6, %v3990_v59, 0  ;;  %v4044_v3 = vsel %vm2558_vm6, %v3991_v60, 0  ;;  %5704 = vmatmul.mubr.msk.bf16.vlgmr.msra.gmra.mrb[76].mxu0 %vm2318_vm5, %v3746_v57  ;;  %5710 = vmatmul.mubr.msk.bf16.vlgmr.msra.gmra.mrb[76].mxu1 %vm2318_vm5, %v3747_v58  ;;  %v5234_v58 = vld [vmem:[%s6451_s30 + $0x3] ss:$0 sm:$0xff]  ;;  %v5233_v59 = vld [vmem:[%s6451_s30 + $0x2] ss:$0 sm:$0xff] }
 0x8ee   : > { %5714 = vmatpush3.bf16.msra.mxu0 %v3998_v2  ;;  %5720 = vmatpush3.bf16.msra.mxu1 %v4044_v3 }
 0x8ef   : > { %5715 = vmatprep.mubr.msk.bf16.mxu0 %vm6131_vm2, %v6130_v10  ;;  %5721 = vmatprep.mubr.msk.bf16.mxu1 %vm6131_vm2, %v6130_v10 }
 0x8f0   : > { %v6833_v4 = vpop.f32.mrb[68].mxu0  ;;  %v6835_v5 = vpop.f32.mrb[68].mxu1  ;;  %5725 = vmatprep.subr.bf16.mxu0 %v6130_v10  ;;  %5731 = vmatprep.subr.bf16.mxu1 %v6130_v10 }
 0x8f1   : > { %v5679_v6 = vpop.f32.mrb[69].mxu0  ;;  %v5687_v62 = vpop.f32.mrb[69].mxu1  ;;  %v3739_v60 = vadd.f32 %v5234_v58, %v6835_v5  ;;  %v3687_v0 = vadd.f32 %v5233_v59, %v6833_v4 }
 0x8f2   : > { %v3689_v8 = vpop.f32.mrb[70].mxu0  ;;  %v3741_v9 = vpop.f32.mrb[70].mxu1 }
 0x8f3   : > { %v5680_v11 = vpop.f32.mrb[71].mxu0  ;;  %v5688_v63 = vpop.f32.mrb[71].mxu1  ;;  %v3993_v62 = vpack.c.bf16 %v3739_v60, %v3739_v60  ;;  %v3992_v9 = vpack.c.bf16 %v3687_v0, %v3687_v0 }
 0x8f5   : > { %v4090_v5 = vsel %vm2558_vm6, %v3992_v9, 0 }
 0x9b8   : > { %v3798_v13 = vpop.f32.mrb[72].mxu0  ;;  %v3844_v14 = vpop.f32.mrb[72].mxu1 }
 0x9b9   : > { %v3799_v1 = vadd.f32 %v5247_v12, %v3798_v13  ;;  %v3845_v15 = vadd.f32 %v5247_v12, %v3844_v14  ;;  %v5693_v16 = vpop.f32.mrb[73].mxu0  ;;  %v5699_v17 = vpop.f32.mrb[73].mxu1  ;;  %v4136_v13 = vsel %vm2558_vm6, %v3993_v62, 0  ;;  %v3040_v14 = vld [vmem:[%s6454_s24 + $0x4] sm:$0xf] }
 0x9ba   : > { %v3801_v18 = vpop.f32.mrb[74].mxu0  ;;  %v3847_v19 = vpop.f32.mrb[74].mxu1  ;;  %v3039_v16 = vld [vmem:[%s6454_s24] sm:$0xf] }
 0x9bb   : > { %v5694_v20 = vpop.f32.mrb[75].mxu0  ;;  %v5700_v21 = vpop.f32.mrb[75].mxu1  ;;  %v3945_v22 = vsel %vm2318_vm5, %v3845_v15, -inf  ;;  %v3942_v23 = vsel %vm2318_vm5, %v3799_v1, -inf  ;;  %v4232_v19 = vsel %vm2558_vm6, %v3040_v14, 0 }
 0x9bc   : > { %3946 = vmax.xlane.f32.xlu1 %v3945_v22  ;;  %3943 = vmax.xlane.f32.xlu0 %v3942_v23  ;;  %v4186_v21 = vsel %vm2558_vm6, %v3039_v16, 0  ;;  %v3042_v22 = vld [vmem:[%s6454_s24 + $0xc] sm:$0xf]  ;;  %v3041_v23 = vld [vmem:[%s6454_s24 + $0x8] sm:$0xf]  ;;  %v5945_v16 = vld [vmem:[%s6463_s11] sm:$0xff]  }
 0x9bd   : > { %v5260_v62 = vld [vmem:[%s1472_s3] ss:$0 sm:$0xff] }
 0x9c0   : > { %v3890_v24 = vpop.f32.mrb[76].mxu0  ;;  %v3936_v25 = vpop.f32.mrb[76].mxu1 }
 0x9c1   : > { %v3891_v26 = vadd.f32 %v5247_v12, %v3890_v24  ;;  %v3937_v27 = vadd.f32 %v5247_v12, %v3936_v25  ;;  %v5705_v28 = vpop.f32.mrb[77].mxu0  ;;  %v5711_v29 = vpop.f32.mrb[77].mxu1 }
 0x9c2   : > { %v3893_v30 = vpop.f32.mrb[78].mxu0  ;;  %v3939_v31 = vpop.f32.mrb[78].mxu1  ;;  %v4324_v28 = vsel %vm2558_vm6, %v3042_v22, 0 }
 0x9c3   : > { %v5706_v32 = vpop.f32.mrb[79].mxu0  ;;  %v5712_v33 = vpop.f32.mrb[79].mxu1  ;;  %v3951_v34 = vsel %vm2318_vm5, %v3937_v27, -inf  ;;  %v3948_v35 = vsel %vm2318_vm5, %v3891_v26, -inf }
 0x9c4   : > { %3952 = vmax.xlane.f32.xlu1 %v3951_v34  ;;  %3949 = vmax.xlane.f32.xlu0 %v3948_v35  ;;  %v4278_v32 = vsel %vm2558_vm6, %v3041_v23, 0 }
 0xa49   : > { %v3947_v36 = vpop.xlane.xlu1 %3946  ;;  %v3944_v37 = vpop.xlane.xlu0 %3943 }
 0xa4a   : > { %v3955_v38 = vsub.f32 %v3845_v15, %v3947_v36  ;;  %v3954_v39 = vsub.f32 %v3799_v1, %v3944_v37 }
 0xa4c   : > { %v3960_v40 = vmul.f32 1.442695, %v3955_v38  ;;  %v3958_v41 = vmul.f32 1.442695, %v3954_v39 }
 0xa4e   : > { %5975 = vpow2.f32 %v3960_v40 }
 0xa4f   : > { %5977 = vpow2.f32 %v3958_v41 }
 0xa51   : > { %v3953_v42 = vpop.xlane.xlu1 %3952  ;;  %v3950_v43 = vpop.xlane.xlu0 %3949 }
 0xa52   : > { %v3957_v44 = vsub.f32 %v3937_v27, %v3953_v42  ;;  %v3956_v45 = vsub.f32 %v3891_v26, %v3950_v43 }
 0xa54   : > { %v3964_v46 = vmul.f32 1.442695, %v3957_v44  ;;  %v3962_v47 = vmul.f32 1.442695, %v3956_v45 }
 0xa56   : > { %5979 = vpow2.f32 %v3964_v46 }
 0xa57   : > { %5981 = vpow2.f32 %v3962_v47 }
 0xa58   : > { %v5976_v48 = vpop.eup %5975 }
 0xa59   : > { %v5978_v49 = vpop.eup %5977  ;;  %v3969_v50 = vsel %vm2318_vm5, %v5976_v48, 0.0 }
 0xa5a   : > { %3970 = vadd.xlane.f32.xlu1 %v3969_v50  ;;  %v3966_v51 = vsel %vm2318_vm5, %v5978_v49, 0.0 }
 0xa5b   : > { %3967 = vadd.xlane.f32.xlu0 %v3966_v51 }
 0xa60   : > { %v5980_v52 = vpop.eup %5979 }
 0xa61   : > { %v5982_v53 = vpop.eup %5981  ;;  %v3975_v54 = vsel %vm2318_vm5, %v5980_v52, 0.0 }
 0xa62   : > { %3976 = vadd.xlane.f32.xlu1 %v3975_v54  ;;  %v3972_v55 = vsel %vm2318_vm5, %v5982_v53, 0.0 }
 0xa63   : > { %3973 = vadd.xlane.f32.xlu0 %v3972_v55 }
 0xae7   : > { %v3971_v56 = vpop.xlane.xlu1 %3970 }
 0xae8   : > { %5983 = vrcp.f32 %v3971_v56  ;;  %v3968_v57 = vpop.xlane.xlu0 %3967 }
 0xae9   : > { %5985 = vrcp.f32 %v3968_v57 }
 0xaef   : > { %v3977_v61 = vpop.xlane.xlu1 %3976 }
 0xaf0   : > { %5987 = vrcp.f32 %v3977_v61  ;;  %v3974_v2 = vpop.xlane.xlu0 %3973 }
 0xaf1   : > { %5989 = vrcp.f32 %v3974_v2 }
 0xaf2   : > { %v5984_v3 = vpop.eup %5983 }
 0xaf3   : > { %v5986_v6 = vpop.eup %5985  ;;  %v3983_v8 = vmul.f32 %v5984_v3, %v5976_v48 }
 0xaf4   : > { %v3982_v11 = vmul.f32 %v5986_v6, %v5978_v49 }
 0xaf5   : > { %v3987_v63 = vpack.c.bf16 %v3983_v8, %v3983_v8 }
 0xaf6   : > { %v3986_v12 = vpack.c.bf16 %v3982_v11, %v3982_v11 }
 0xaf7   : > { %5722 = vmatmul.mubr.msk.bf16.vlgmr.msra.gmra.mrb[80].mxu1 %vm2318_vm5, %v3987_v63 }
 0xaf8   : > { %5716 = vmatmul.mubr.msk.bf16.vlgmr.msra.gmra.mrb[80].mxu0 %vm2318_vm5, %v3986_v12  ;;  %5732 = vmatpush3.bf16.msra.mxu1 %v4136_v13 }
 0xaf9   : > { %5726 = vmatpush3.bf16.msra.mxu0 %v4090_v5  ;;  %5727 = vmatprep.mubr.msk.bf16.mxu0 %vm6131_vm2, %v6130_v10 }
 0xafa   : > { %v5988_v4 = vpop.eup %5987  ;;  %5733 = vmatprep.mubr.msk.bf16.mxu1 %vm6131_vm2, %v6130_v10  ;;  %5737 = vmatprep.subr.bf16.mxu0 %v6130_v10 }
 0xafb   : > { %v5990_v1 = vpop.eup %5989  ;;  %v3985_v15 = vmul.f32 %v5988_v4, %v5980_v52  ;;  %5743 = vmatprep.subr.bf16.mxu1 %v6130_v10 }
 0xafc   : > { %v3984_v17 = vmul.f32 %v5990_v1, %v5982_v53 }
 0xafd   : > { %v3989_v18 = vpack.c.bf16 %v3985_v15, %v3985_v15 }
 0xafe   : > { %v3988_v20 = vpack.c.bf16 %v3984_v17, %v3984_v17  ;;  %v5946_v17 = vld [vmem:[%s6463_s11 + $0x8] sm:$0xff]  }
 0xaff   : > { %5734 = vmatmul.mubr.msk.bf16.vlgmr.msra.gmra.mrb[84].mxu1 %vm2318_vm5, %v3989_v18  ;;  %v5947_v18 = vld [vmem:[%s6469_s14] sm:$0xff]  }
 0xb00   : > { %5728 = vmatmul.mubr.msk.bf16.vlgmr.msra.gmra.mrb[84].mxu0 %vm2318_vm5, %v3988_v20  ;;  %5744 = vmatpush3.bf16.msra.mxu1 %v4232_v19 }
 0xb01   : > { %5738 = vmatpush3.bf16.msra.mxu0 %v4186_v21  ;;  %5739 = vmatprep.mubr.msk.bf16.mxu0 %vm6131_vm2, %v6130_v10 }
 0xb02   : > { %5745 = vmatprep.mubr.msk.bf16.mxu1 %vm6131_vm2, %v6130_v10  ;;  %5749 = vmatprep.subr.bf16.mxu0 %v6130_v10 }
 0xb03   : > { %5755 = vmatprep.subr.bf16.mxu1 %v6130_v10 }
 0xbca   : > { %v4080_v24 = vpop.f32.mrb[80].mxu1 }
 0xbcb   : > { %v4034_v25 = vpop.f32.mrb[80].mxu0  ;;  %v4179_v26 = vpack.c.bf16 %v4080_v24, %v4080_v24  ;;  %v5723_v27 = vpop.f32.mrb[81].mxu1 }
 0xbcc   : > { %v4178_v29 = vpack.c.bf16 %v4034_v25, %v4034_v25  ;;  %v5717_v30 = vpop.f32.mrb[81].mxu0  ;;  %v4083_v31 = vpop.f32.mrb[82].mxu1  ;;  %v5261_v27 = vld [vmem:[%s1475_s28] ss:$0 sm:$0xff] }
 0xbcd   : > { %v4037_v33 = vpop.f32.mrb[82].mxu0  ;;  %v5724_v34 = vpop.f32.mrb[83].mxu1  ;;  %5746 = vmatmul.mubr.msk.bf16.vlgmr.msra.gmra.mrb[88].mxu1 %vm2318_vm5, %v4179_v26  ;;  %v5262_v30 = vld [vmem:[%s1478_s6] ss:$0 sm:$0xff] }
 0xbce   : > { %v5718_v35 = vpop.f32.mrb[83].mxu0  ;;  %5740 = vmatmul.mubr.msk.bf16.vlgmr.msra.gmra.mrb[88].mxu0 %vm2318_vm5, %v4178_v29  ;;  %5756 = vmatpush3.bf16.msra.mxu1 %v4324_v28  ;;  %v5949_v34 = vld [vmem:[%s6469_s14 + $0x10] sm:$0xff]  }
 0xbcf   : > { %5750 = vmatpush3.bf16.msra.mxu0 %v4278_v32  ;;  %5751 = vmatprep.mubr.msk.bf16.mxu0 %vm6131_vm2, %v6130_v10  ;;  %v5950_v35 = vld [vmem:[%s6469_s14 + $0x18] sm:$0xff]  }
 0xbd0   : > { %5757 = vmatprep.mubr.msk.bf16.mxu1 %vm6131_vm2, %v6130_v10  ;;  %5761 = vmatprep.subr.bf16.mxu0 %v6130_v10 }
 0xbd1   : > { %5769 = vmatprep.subr.bf16.mxu1 %v6130_v10 }
 0xbd2   : > { %v4172_v36 = vpop.f32.mrb[84].mxu1 }
 0xbd3   : > { %v4126_v37 = vpop.f32.mrb[84].mxu0  ;;  %v4181_v38 = vpack.c.bf16 %v4172_v36, %v4172_v36  ;;  %v5735_v39 = vpop.f32.mrb[85].mxu1  ;;  %v5263_v36 = vld [vmem:[%s1486_s13] ss:$0 sm:$0xff]  ;;  %s7137_s13 = sld [smem:[#allocation43_spill]] }
 0xbd4   : > { %v4180_v40 = vpack.c.bf16 %v4126_v37, %v4126_v37  ;;  %v5729_v41 = vpop.f32.mrb[85].mxu0  ;;  %v4175_v42 = vpop.f32.mrb[86].mxu1 }
 0xbd5   : > { %v4129_v43 = vpop.f32.mrb[86].mxu0  ;;  %v5736_v44 = vpop.f32.mrb[87].mxu1  ;;  %5758 = vmatmul.mubr.msk.bf16.vlgmr.msra.gmra.mrb[92].mxu1 %vm2318_vm5, %v4181_v38 }
 0xbd6   : > { %v5730_v45 = vpop.f32.mrb[87].mxu0  ;;  %5752 = vmatmul.mubr.msk.bf16.vlgmr.msra.gmra.mrb[92].mxu0 %vm2318_vm5, %v4180_v40  ;;  %5777 = vmatprep.mubr.msk.bf16.mxu1 %vm6131_vm2, %v6130_v10  ;;  %v5267_v44 = vld [vmem:[%s1494_s2] ss:$0 sm:$0xff] }
 0xbd7   : > { %5765 = vmatprep.mubr.msk.bf16.mxu0 %vm6131_vm2, %v6130_v10  ;;  %5762 = vmatpush3.bf16.msra.mxu0 %v5945_v16 }
 0xbd8   : > { %5763 = vmatprep.subr.bf16.mxu0 %v6130_v10  ;;  %5770 = vmatpush3.bf16.msra.mxu1 %v5947_v18 }
 0xbd9   : > { %5771 = vmatprep.subr.bf16.mxu1 %v6130_v10  ;;  %p5273_p1 = scmp.ne.s32.totalorder %s7137_s13, 1 }
 0xbda   : > { %vm6133_vm12 = vmmov (!%p5273_p1), 0   ;;  %s7139_s6 = sld [smem:[#allocation35_spill]] (!%p5273_p1)  ;;  %s7140_s1 = sld [smem:[#allocation36_spill]] (!%p5273_p1) }
 0xbdb   : > { %5764 = vmatpush3.bf16.msra.mxu0 %v5946_v17  ;;  %s7141_s28 = sld [smem:[#allocation38_spill]] (!%p5273_p1) }
 0xca0   : > { %v4268_v46 = vpop.f32.mrb[88].mxu1 }
 0xca1   : > { %v4222_v47 = vpop.f32.mrb[88].mxu0  ;;  %v4367_v48 = vsel %vm1508_vm1, %v4268_v46, 0.0  ;;  %v5747_v49 = vpop.f32.mrb[89].mxu1 }
 0xca2   : > { %v4366_v50 = vsel %vm1508_vm1, %v4222_v47, 0.0  ;;  %v5741_v51 = vpop.f32.mrb[89].mxu0  ;;  %v4271_v52 = vpop.f32.mrb[90].mxu1 }
 0xca3   : > { %v4368_v53 = vadd.f32 %v4367_v48, %v4366_v50  ;;  %v4225_v54 = vpop.f32.mrb[90].mxu0  ;;  %v5748_v55 = vpop.f32.mrb[91].mxu1 }
 0xca4   : > { %v5742_v56 = vpop.f32.mrb[91].mxu0 }
 0xca8   : > { %v4360_v57 = vpop.f32.mrb[92].mxu1 }
 0xca9   : > { %v4314_v58 = vpop.f32.mrb[92].mxu0  ;;  %v5759_v59 = vpop.f32.mrb[93].mxu1  ;;  %v4371_v8 = vsel %vm1508_vm1, %v4360_v57, 0.0  ;;  %v6132_v57 = vmov (!%p5273_p1), 0.0  }
 0xcaa   : > { %v4369_v60 = vsel %vm1508_vm1, %v4314_v58, 0.0  ;;  %v5753_v61 = vpop.f32.mrb[93].mxu0  ;;  %v4363_v0 = vpop.f32.mrb[94].mxu1  ;;  %5781 = vmatprep.subr.bf16.mxu0 (!%p5273_p1), %v6132_v57 }
 0xcab   : > { %v4370_v2 = vadd.f32 %v4369_v60, %v4368_v53  ;;  %v4317_v3 = vpop.f32.mrb[94].mxu0  ;;  %v5760_v6 = vpop.f32.mrb[95].mxu1 }
 0xcac   : > { %v5754_v9 = vpop.f32.mrb[95].mxu0 }
 0xcad   : > { %v4372_v11 = vadd.f32 %v4371_v8, %v4370_v2  ;;  %v5274_v8 = vld [vmem:[%s7139_s6] ss:$0 sm:$0xff] (!%p5273_p1) }
 0xcaf   : > { %v4379_v63 = vadd.f32 %v5260_v62, %v4372_v11 }
 0xcb1   : > { %v4380_v12 = vadd.f32 %v4379_v63, %v6691_v7  ;;  %v5948_v7 = vld [vmem:[%s6469_s14 + $0x8] sm:$0xff]   ;;  %s7138_s14 = sld [smem:[#allocation37_spill]] (!%p5273_p1)  ;;  %v5275_v63 = vld [vmem:[%s7140_s1] ss:$0 sm:$0xff] (!%p5273_p1) }
 0xcb2   : > { %5772 = vmatpush3.bf16.msra.mxu1 %v5948_v7 }
 0xcb3   : > { %v4383_v13 = vsel %vm1508_vm1, %v4380_v12, 0.0  ;;  %5773 = vmatprep.subr.bf16.mxu1 %v6130_v10 }
 0xcb4   : > { %4384 = vadd.xlane.f32.xlu0 %v4383_v13 }
 0xcb6   : > { %5774 = vmatpush3.bf16.msra.mxu1 %v5949_v34 }
 0xcb7   : > { %5775 = vmatprep.subr.bf16.mxu1 %v6130_v10  ;;  %v5995_v56 = vld [vmem:[%s7138_s14] sm:$0xff] (!%p5273_p1)   ;;  %v5996_v58 = vld [vmem:[%s7138_s14 + $0x8] sm:$0xff] (!%p5273_p1)  }
 0xcba   : > { %5776 = vmatpush3.bf16.msra.mxu1 %v5950_v35 }
 0xd41   : > { %v4385_v5 = vpop.xlane.xlu0 %4384 }
 0xd42   : > { %v4386_v4 = vmul.f32 0.03125, %v4385_v5 }
 0xd44   : > { %v4387_v14 = vsub.f32 %v4380_v12, %v4386_v4  ;;  %v5276_v4 = vld [vmem:[%s7141_s28] ss:$0 sm:$0xff] (!%p5273_p1) }
 0xd46   : > { %v4388_v1 = vmul.f32 %v4387_v14, %v4387_v14  ;;  %v4399_v28 = vmul.f32 %v5261_v27, %v4387_v14 }
 0xd48   : > { %v4389_v15 = vsel %vm1508_vm1, %v4388_v1, 0.0 }
 0xd49   : > { %4390 = vadd.xlane.f32.xlu1 %v4389_v15 }
 0xdd6   : > { %v4391_v19 = vpop.xlane.xlu1 %4390 }
 0xdd7   : > { %v4392_v20 = vmul.f32 0.032258064, %v4391_v19 }
 0xdd9   : > { %5991 = vrsqrt.f32 %v4392_v20  ;;  %vm4402_vm9 = vcmp.eq.f32.partialorder %v4392_v20, inf  ;;  %v4405_v23 = vand.u32 2147483648, %v4392_v20  ;;  %vm4404_vm10 = vcmp.eq.f32.partialorder %v4392_v20, 0.0 }
 0xde3   : > { %v5992_v21 = vpop.eup %5991 }
 0xde4   : > { %v4401_v22 = vmul.f32 %v5992_v21, %v4392_v20 }
 0xde6   : > { %v4403_v24 = vsel %vm4402_vm9, %v4392_v20, %v4401_v22 }
 0xde7   : > { %v4406_v25 = vsel %vm4404_vm10, %v4405_v23, %v4403_v24 }
 0xde8   : > { %v4407_v26 = vadd.f32 1e-06, %v4406_v25 }
 0xdea   : > { %5993 = vrcp.f32 %v4407_v26 }
 0xdf4   : > { %v5994_v29 = vpop.eup %5993 }
 0xdf5   : > { %v4409_v31 = vmul.f32 %v5994_v29, %v4399_v28 }
 0xdf7   : > { %v4416_v32 = vadd.f32 %v5262_v30, %v4409_v31 }
 0xdf9   : > { %v4431_v33 = vpack.c.bf16 %v4416_v32, %v4416_v32 }
 0xdfb   : > { %5766 = vmatmul.mubr.msk.bf16.vlgmr.msra.gmra.mrb[96].mxu0 %vm1508_vm1, %v4431_v33 }
 0xdfc   : > { %5785 = vmatprep.mubr.msk.bf16.mxu0 (!%p5273_p1), %vm6133_vm12, %v6132_v57  ;;  %5782 = vmatpush3.bf16.msra.mxu0 (!%p5273_p1), %v5995_v56 }
 0xdfd   : > { %5783 = vmatprep.subr.bf16.mxu0 (!%p5273_p1), %v6132_v57 }
 0xe00   : > { %5784 = vmatpush3.bf16.msra.mxu0 (!%p5273_p1), %v5996_v58 }
 0xece   : > { %v4487_v37 = vpop.f32.mrb[96].mxu0 }
 0xecf   : > { %v4488_v38 = vadd.f32 %v5263_v36, %v4487_v37  ;;  %v5767_v39 = vpop.f32.mrb[97].mxu0 }
 0xed0   : > { %v4490_v40 = vpop.f32.mrb[98].mxu0 }
 0xed1   : > { %v4493_v41 = vmax.f32 %v4488_v38, 0.0  ;;  %v5768_v42 = vpop.f32.mrb[99].mxu0 }
 0xed3   : > { %v4494_v43 = vpack.c.bf16 %v4493_v41, %v4493_v41 }
 0xed5   : > { %5778 = vmatmul.mubr.msk.bf16.vlgmr.msra.gmra.mrb[96].mxu1 %vm4525_vm11, %v4494_v43 }
 0xfa7   : > { %4574 = sbr.rel (%p5273_p1) target bundleno = 4556 (0x11cc), region = 160 }
 0xfa8   : > { %v4563_v45 = vpop.f32.mrb[96].mxu1 }
 0xfa9   : > { %v4564_v46 = vadd.f32 %v5267_v44, %v4563_v45  ;;  %v5779_v47 = vpop.f32.mrb[97].mxu1 }
 0xfaa   : > { %v4566_v48 = vpop.f32.mrb[98].mxu1 }
 0xfab   : > { %v4569_v10 = vadd.f32 %v4564_v46, %v4380_v12  ;;  %v5780_v49 = vpop.f32.mrb[99].mxu1 }
 0xfad   : > { %4570 = vst.msk [vmem:[#allocation2] sm:$0xff] %vm1508_vm1, %v4569_v10  ;;  %v4577_v50 = vsel (!%p5273_p1), %vm1508_vm1, %v4569_v10, 0.0 }
 0xfae   : > { %4578 = vadd.xlane.f32.xlu0 %v4577_v50 }
0x103b   : > { %v4579_v51 = vpop.xlane.xlu0 %4578 }
0x103c   : > { %v4580_v52 = vmul.f32 0.03125, %v4579_v51 }
0x103e   : > { %v4581_v53 = vsub.f32 %v4569_v10, %v4580_v52 }
0x1040   : > { %v4582_v54 = vmul.f32 %v4581_v53, %v4581_v53  ;;  %v4593_v9 = vmul.f32 %v5274_v8, %v4581_v53 }
0x1042   : > { %v4583_v55 = vsel %vm1508_vm1, %v4582_v54, 0.0 }
0x1043   : > { %4584 = vadd.xlane.f32.xlu0 %v4583_v55 }
0x10d0   : > { %v4585_v59 = vpop.xlane.xlu0 %4584 }
0x10d1   : > { %v4586_v60 = vmul.f32 0.032258064, %v4585_v59 }
0x10d3   : > { %5997 = vrsqrt.f32 %v4586_v60  ;;  %vm4596_vm13 = vcmp.eq.f32.partialorder %v4586_v60, inf  ;;  %v4599_v2 = vand.u32 2147483648, %v4586_v60  ;;  %vm4598_vm14 = vcmp.eq.f32.partialorder %v4586_v60, 0.0 }
0x10dd   : > { %v5998_v61 = vpop.eup %5997 }
0x10de   : > { %v4595_v0 = vmul.f32 %v5998_v61, %v4586_v60 }
0x10e0   : > { %v4597_v3 = vsel %vm4596_vm13, %v4586_v60, %v4595_v0 }
0x10e1   : > { %v4600_v6 = vsel %vm4598_vm14, %v4599_v2, %v4597_v3 }
0x10e2   : > { %v4601_v62 = vadd.f32 1e-06, %v4600_v6 }
0x10e4   : > { %5999 = vrcp.f32 %v4601_v62 }
0x10ee   : > { %v6000_v11 = vpop.eup %5999 }
0x10ef   : > { %v4603_v12 = vmul.f32 %v6000_v11, %v4593_v9 }
0x10f1   : > { %v4610_v13 = vadd.f32 %v5275_v63, %v4603_v12 }
0x10f3   : > { %v4611_v5 = vpack.c.bf16 %v4610_v13, %v4610_v13 }
0x10f5   : > { %5786 = vmatmul.mubr.msk.bf16.vlgmr.msra.gmra.mrb[0].mxu0 %vm1508_vm1, %v4611_v5 }
0x11c8   : > { %v4672_v14 = vpop.f32.mrb[0].mxu0 }
0x11c9   : > { %v4673_v1 = vadd.f32 %v5276_v4, %v4672_v14  ;;  %v5787_v15 = vpop.f32.mrb[1].mxu0 }
0x11ca   : > { %v4675_v16 = vpop.f32.mrb[2].mxu0 }
0x11cb   : > { %4678 = vst [vmem:[%s1379_s16] sm:$0xff] %v4673_v1  ;;  %v5788_v17 = vpop.f32.mrb[3].mxu0 }
0x11cc PF: > { %s7143_s29 = sld [smem:[#allocation44_spill]]  ;;  %s7144_s8 = sld [smem:[#allocation39_spill]] }
0x11cd   : > { %s7146_s27 = sld [smem:[#allocation41_spill]]  ;;  %s4693_s18 = sshll.u32 %s1379_s16, 4  ;;  %s4694_s18 = int_to_ptr.vmem [resolvable:$true] %s4693_s18 }
0x11ce   : > { %s6001_s22 = scalar_lea.vmem %s4694_s18, 128  ;;  %s6134_s7 = smov [#allocation3]  }
0x11cf   : > { %p6002_p2 = scmp.ne.s32.totalorder %s4694_s18, %s6001_s22  ;;  %s6005_s12 = sshll.u32 %s6134_s7, 4  ;;  %s6006_s12 = int_to_ptr.vmem [resolvable:$false] %s6005_s12 }
0x11d0   : > { %s6007_s5 = scalar_lea.vmem %s6006_s12, 256  ;;  %p6008_p6 = scmp.lt.s32.totalorder %s4694_s18, %s6006_s12 }
0x11d1   : > { %p6003_p4 = pnand %p6002_p2, %p6359_p3  ;;  %p6009_p7 = scmp.lt.s32.totalorder %s6007_s5, %s6001_s22 }
0x11d2   : > { %s5281_s10 = sshll.u32 %s7143_s29, 7 }
0x11d3   : > { %s6941_s15 = scalar_lea.hbm %s7144_s8, %s5281_s10  ;;  %s7148_s23 = sand.u32 1, %s7146_s27  }
0x11d4   : > { %s4680_s26 = scalar_lea.sflag [#allocation4], %s7148_s23  ;;  %p6004_p5 = pneg %p6003_p4 }
0x11d5   : > { %p6010_p8 = por %p6009_p7, %p6008_p6 }
0x11d7   : > { %p6011_p10 = pnand %p6010_p8, %p6004_p5 }
0x11d9   : > { %6014 = shalt.err (!%p6011_p10)
}
0x11da   : > { %s6015_s16 = scalar_lea.hbm %s6941_s15, 128  ;;  %s6019_s9 = scalar_lea.hbm %s7144_s8, 256 }
0x11db   : > { %p6016_p11 = scmp.ne.s32.totalorder %s6941_s15, %s6015_s16  ;;  %p6020_p0 = scmp.lt.u32.totalorder %s6941_s15, %s7144_s8 }
0x11dc   : > { %p6021_p1 = scmp.lt.u32.totalorder %s6019_s9, %s6015_s16  ;;  %p6023_p4 = scmp.lt.u32.totalorder %s6015_s16, %s6941_s15 }
0x11dd   : > { %p6017_p12 = pnand %p6016_p11, %p6359_p3 }
0x11de   : > { %p6022_p2 = por %p6021_p1, %p6020_p0 }
0x11df   : > { %p6018_p13 = pneg %p6017_p12 }
0x11e0   : > { %p6024_p6 = por %p6023_p4, %p6022_p2 }
0x11e2   : > { %p6025_p5 = pnand %p6024_p6, %p6018_p13 }
0x11e4   : > { %6028 = shalt.err (!%p6025_p5)
}
0x11e5   : > { %5789 = dma.vmem_to_hbm [thread:$0]  (%p6359_p3), %s4694_s18, 128, %s6941_s15, %s4680_s26  }
0x11e6 PF: > { %s7149_s19 = sld [smem:[#allocation47_spill]]  ;;  %s7150_s21 = sld [smem:[#allocation40_spill]] }
0x11ec   : > { %p5795_p7 = scmp.ge.s32.totalorder %s7149_s19, 2  ;;  %s4705_s17 = sand.u32 1, %s7150_s21  }
0x11ed   : > { %s4706_s24 = scalar_lea.sflag [#allocation4], %s4705_s17 }
0x11ee   : > { %p5792_p8 = pnand %p5795_p7, %p6369_p9 }
0x11f0   : > { %6062 = dma.done.wait (!%p5792_p8), %s4706_s24, 128  }
0x11f1   : > { %6064 = vsyncadd (!%p5792_p8), %s4706_s24, 4294967168  ;;  %s80_s23 = sadd.s32 1, %s7149_s19   ;;  %s7152_s7 = sld [smem:[#allocation41_spill]] }
0x11f2   : > { %p77_p10 = scmp.ge.s32.totalorder %s80_s23, 6   ;;  %s7153_s10 = sld [smem:[#allocation42_spill]] }
0x11f3   : > { %s7154_s11 = sld [smem:[#allocation52_spill]]  ;;  %s7155_s15 = sld [smem:[#allocation45_spill]] }
0x11f4   : > { %s7156_s16 = sld [smem:[#allocation46_spill]]  ;;  %s7157_s18 = sld [smem:[#allocation48_spill]] }
0x11f5   : > { %s7158_s22 = sld [smem:[#allocation50_spill]]  ;;  %79 = sbr.rel (!%p77_p10) target bundleno = 82 (0x52), region = 312 }
0x11fc   :  { %4711 = vsyncpa [#allocation4], 1 }
0x11fd   :  { %4713 = vsyncpa [#allocation4 + $0x1], 1 }

</bundles_post_ra>
